<compile_context>
chip_gen: v5e
topology: v5e:2x2
jax: 0.10.0
libtpu: 0.0.40
codegen_flags: <defaults>
</compile_context>

<pallas_src>
import functools
import math

import numpy as np
import jax
import jax.numpy as jnp
from jax import lax
from jax.experimental import pallas as pl
from jax.experimental.pallas import tpu as pltpu


def _round_up(x, m):
    return ((x + m - 1) // m) * m


def _pick_tile(dim, cands):
    for c in cands:
        if dim % c == 0:
            return c
    return 128  # dim is always a multiple of 128 here


# ---------------------------------------------------------------------------
# Pallas kernels
# ---------------------------------------------------------------------------
def _mm1_kernel(a_ref, b_ref, bias_ref, o_ref):
    """Single-K-step matmul + bias (no scratch accumulator)."""
    o_ref[...] = (jnp.dot(a_ref[...], b_ref[...],
                          preferred_element_type=jnp.float32) + bias_ref[...])


def _mm_kernel(a_ref, b_ref, bias_ref, o_ref, acc_ref):
    """Tiled matmul + bias; f32 accumulation in VMEM scratch."""
    k = pl.program_id(2)

    @pl.when(k == 0)
    def _():
        acc_ref[...] = jnp.zeros_like(acc_ref)

    acc_ref[...] += jnp.dot(a_ref[...], b_ref[...],
                            preferred_element_type=jnp.float32)

    @pl.when(k == pl.num_programs(2) - 1)
    def _():
        o_ref[...] = acc_ref[...] + bias_ref[...]


def _mm1_bn_kernel(a_ref, b_ref, bias_ref, o_ref, sum_ref, sq_ref, *, tm, m):
    """Single-K matmul + bias with fused per-channel sum / sumsq (BN stats)."""
    i = pl.program_id(1)
    y = (jnp.dot(a_ref[...], b_ref[...],
                 preferred_element_type=jnp.float32) + bias_ref[...])
    o_ref[...] = y

    @pl.when(i == 0)
    def _():
        sum_ref[...] = jnp.zeros_like(sum_ref)
        sq_ref[...] = jnp.zeros_like(sq_ref)

    rows = i * tm + lax.broadcasted_iota(jnp.int32, y.shape, 0)
    ym = jnp.where(rows < m, y, 0.0)                # mask padded / OOB rows
    sum_ref[...] += jnp.sum(ym, axis=0, keepdims=True)
    sq_ref[...] += jnp.sum(ym * ym, axis=0, keepdims=True)


def _mm_bn_kernel(a_ref, b_ref, bias_ref, o_ref, sum_ref, sq_ref, acc_ref, *, tm, m):
    """Multi-K matmul + bias with fused BN statistics in the epilogue."""
    i = pl.program_id(1)
    k = pl.program_id(2)

    @pl.when(k == 0)
    def _():
        acc_ref[...] = jnp.zeros_like(acc_ref)

    acc_ref[...] += jnp.dot(a_ref[...], b_ref[...],
                            preferred_element_type=jnp.float32)

    @pl.when((i == 0) & (k == 0))
    def _():
        sum_ref[...] = jnp.zeros_like(sum_ref)
        sq_ref[...] = jnp.zeros_like(sq_ref)

    @pl.when(k == pl.num_programs(2) - 1)
    def _():
        y = acc_ref[...] + bias_ref[...]
        o_ref[...] = y
        rows = i * tm + lax.broadcasted_iota(jnp.int32, y.shape, 0)
        ym = jnp.where(rows < m, y, 0.0)
        sum_ref[...] += jnp.sum(ym, axis=0, keepdims=True)
        sq_ref[...] += jnp.sum(ym * ym, axis=0, keepdims=True)


def _bnact_kernel(x_ref, s_ref, t_ref, o_ref, *, relu):
    """Fused BatchNorm apply (scale/shift) + optional ReLU."""
    y = x_ref[...] * s_ref[...] + t_ref[...]
    if relu:
        y = jnp.maximum(y, 0.0)
    o_ref[...] = y


def _bnact_res_kernel(x_ref, r_ref, s_ref, t_ref, o_ref):
    """Fused BatchNorm apply + residual add + ReLU (bottleneck tail)."""
    o_ref[...] = jnp.maximum(x_ref[...] * s_ref[...] + t_ref[...] + r_ref[...], 0.0)


def _attention_kernel(pooled_ref, w1_ref, w2_ref, bn_ref, o_ref):
    """Linear(F,128,bias=False) -> BatchNorm1d(1) (batch stats over all elems)
    -> Tanh -> Linear(128,L*3,bias=False) -> Softmax(dim=0)."""
    h = jnp.dot(pooled_ref[...], w1_ref[...], preferred_element_type=jnp.float32)
    mean = jnp.mean(h)
    var = jnp.maximum(jnp.mean(jnp.square(h - mean)), 0.0)
    gamma = bn_ref[0]
    beta = bn_ref[1]
    h = jnp.tanh((h - mean) * lax.rsqrt(var + 1e-5) * gamma + beta)
    logits = jnp.dot(h, w2_ref[...], preferred_element_type=jnp.float32)
    m = jnp.max(logits, axis=0, keepdims=True)     # softmax over dim 0
    e = jnp.exp(logits - m)
    o_ref[...] = e / jnp.sum(e, axis=0, keepdims=True)


# ---------------------------------------------------------------------------
# Pallas wrappers (jit-cached by shape)
# ---------------------------------------------------------------------------
@functools.partial(jax.jit, static_argnames=("with_stats",))
def _mm(a, b, bias, with_stats):
    """(M,K)@(K,N)+bias in bf16 with f32 accumulation.  Optionally also emits
    per-channel (sum, sumsq) of the valid output rows (fused BN statistics)."""
    M, K = a.shape
    N = b.shape[1]
    M8 = _round_up(M, 8)
    Kp = _round_up(K, 128)
    Np = _round_up(N, 128)

    a = a.astype(jnp.bfloat16)
    b = b.astype(jnp.bfloat16)
    bias2 = bias.astype(jnp.float32).reshape(1, N)
    if (M8, Kp) != (M, K):
        a = jnp.pad(a, ((0, M8 - M), (0, Kp - K)))
    if (Kp, Np) != (K, N):
        b = jnp.pad(b, ((0, Kp - K), (0, Np - N)))
    if Np != N:
        bias2 = jnp.pad(bias2, ((0, 0), (0, Np - N)))

    tm = min(512, M8)
    tk = Kp if Kp <= 512 else _pick_tile(Kp, (512, 384, 256))
    tn = Np if Np <= 512 else _pick_tile(Np, (512, 384, 256))
    gm, gn, gk = pl.cdiv(M8, tm), Np // tn, Kp // tk

    o_shape = jax.ShapeDtypeStruct((M8, Np), jnp.float32)
    s_shape = jax.ShapeDtypeStruct((1, Np), jnp.float32)

    if gk == 1:
        in_specs = [pl.BlockSpec((tm, tk), lambda j, i: (i, 0)),
                    pl.BlockSpec((tk, tn), lambda j, i: (0, j)),
                    pl.BlockSpec((1, tn), lambda j, i: (0, j))]
        o_spec = pl.BlockSpec((tm, tn), lambda j, i: (i, j))
        s_spec = pl.BlockSpec((1, tn), lambda j, i: (0, j))
        grid = (gn, gm)
        scratch = []
        if with_stats:
            kernel = functools.partial(_mm1_bn_kernel, tm=tm, m=M)
            out_shape = (o_shape, s_shape, s_shape)
            out_specs = (o_spec, s_spec, s_spec)
            dims = ("parallel", "arbitrary")
        else:
            kernel = _mm1_kernel
            out_shape = o_shape
            out_specs = o_spec
            dims = ("parallel", "parallel")
    else:
        in_specs = [pl.BlockSpec((tm, tk), lambda j, i, k: (i, k)),
                    pl.BlockSpec((tk, tn), lambda j, i, k: (k, j)),
                    pl.BlockSpec((1, tn), lambda j, i, k: (0, j))]
        o_spec = pl.BlockSpec((tm, tn), lambda j, i, k: (i, j))
        s_spec = pl.BlockSpec((1, tn), lambda j, i, k: (0, j))
        grid = (gn, gm, gk)
        scratch = [pltpu.VMEM((tm, tn), jnp.float32)]
        if with_stats:
            kernel = functools.partial(_mm_bn_kernel, tm=tm, m=M)
            out_shape = (o_shape, s_shape, s_shape)
            out_specs = (o_spec, s_spec, s_spec)
            dims = ("parallel", "arbitrary", "arbitrary")
        else:
            kernel = _mm_kernel
            out_shape = o_shape
            out_specs = o_spec
            dims = ("parallel", "parallel", "arbitrary")

    return pl.pallas_call(
        kernel,
        out_shape=out_shape,
        grid_spec=pltpu.PrefetchScalarGridSpec(
            num_scalar_prefetch=0, grid=grid,
            in_specs=in_specs, out_specs=out_specs,
            scratch_shapes=scratch),
        compiler_params=pltpu.CompilerParams(dimension_semantics=dims),
    )(a, b, bias2)


def pallas_matmul(a, b, bias=None):
    M = a.shape[0]
    N = b.shape[1]
    if bias is None:
        bias = jnp.zeros((N,), jnp.float32)
    out = _mm(a, b, bias, with_stats=False)
    return out[:M, :N]


def _bn_apply_specs(tp, Cf):
    x_spec = pl.BlockSpec((tp, Cf), lambda i: (i, 0))
    v_spec = pl.BlockSpec((1, Cf), lambda i: (0, 0))
    return x_spec, v_spec


@functools.partial(jax.jit, static_argnames=("relu",))
def _bn_apply_call(x2, scale2, shift2, relu):
    R, Cf = x2.shape
    R8 = _round_up(R, 8)
    if R8 != R:
        x2 = jnp.pad(x2, ((0, R8 - R), (0, 0)))
    tp = min(2048, R8)
    x_spec, v_spec = _bn_apply_specs(tp, Cf)
    y = pl.pallas_call(
        functools.partial(_bnact_kernel, relu=relu),
        out_shape=jax.ShapeDtypeStruct((R8, Cf), jnp.float32),
        grid_spec=pltpu.PrefetchScalarGridSpec(
            num_scalar_prefetch=0, grid=(pl.cdiv(R8, tp),),
            in_specs=[x_spec, v_spec, v_spec],
            out_specs=pl.BlockSpec((tp, Cf), lambda i: (i, 0))),
        compiler_params=pltpu.CompilerParams(dimension_semantics=("parallel",)),
    )(x2, scale2, shift2)
    return y[:R]


@jax.jit
def _bn_apply_res_call(x2, r2, scale2, shift2):
    R, Cf = x2.shape
    R8 = _round_up(R, 8)
    if R8 != R:
        x2 = jnp.pad(x2, ((0, R8 - R), (0, 0)))
        r2 = jnp.pad(r2, ((0, R8 - R), (0, 0)))
    tp = min(2048, R8)
    x_spec, v_spec = _bn_apply_specs(tp, Cf)
    y = pl.pallas_call(
        _bnact_res_kernel,
        out_shape=jax.ShapeDtypeStruct((R8, Cf), jnp.float32),
        grid_spec=pltpu.PrefetchScalarGridSpec(
            num_scalar_prefetch=0, grid=(pl.cdiv(R8, tp),),
            in_specs=[x_spec, x_spec, v_spec, v_spec],
            out_specs=pl.BlockSpec((tp, Cf), lambda i: (i, 0))),
        compiler_params=pltpu.CompilerParams(dimension_semantics=("parallel",)),
    )(x2, r2, scale2, shift2)
    return y[:R]


@jax.jit
def _attention_call(pooled_pad, w1_pad, w2_pad, bn_vec):
    return pl.pallas_call(
        _attention_kernel,
        out_shape=jax.ShapeDtypeStruct(
            (pooled_pad.shape[0], w2_pad.shape[1]), jnp.float32),
        in_specs=[pl.BlockSpec(memory_space=pltpu.MemorySpace.VMEM),
                  pl.BlockSpec(memory_space=pltpu.MemorySpace.VMEM),
                  pl.BlockSpec(memory_space=pltpu.MemorySpace.VMEM),
                  pl.BlockSpec(memory_space=pltpu.MemorySpace.SMEM)],
        out_specs=pl.BlockSpec(memory_space=pltpu.MemorySpace.VMEM),
    )(pooled_pad, w1_pad, w2_pad, bn_vec)


# ---------------------------------------------------------------------------
# NN building blocks (JAX glue around the Pallas kernels)
# ---------------------------------------------------------------------------
def _im2col(x, w, stride, padding, dilation):
    """NHWC x, OIHW w -> bf16 cols (M, kh*kw*Cin) and bf16 weight matrix."""
    # TODO(synk): a direct (im2col-free) Pallas conv that reads the NHWC
    # activation per tap would cut HBM traffic further for the dilated 3x3
    # branches; im2col is kept (built directly in bf16, no re-pad copies).
    N, H, W, Cin = x.shape
    Cout, _, kh, kw = w.shape
    s, p, d = stride, padding, dilation
    Ho = (H + 2 * p - d * (kh - 1) - 1) // s + 1
    Wo = (W + 2 * p - d * (kw - 1) - 1) // s + 1
    if kh == 1 and kw == 1 and p == 0 and d == 1:
        xs = x[:, ::s, ::s, :] if s != 1 else x
        cols = xs.reshape(N * Ho * Wo, Cin)
        wm = jnp.transpose(w[:, :, 0, 0], (1, 0))
    else:
        xp = jnp.pad(x, ((0, 0), (p, p), (p, p), (0, 0)))
        pats = []
        for i in range(kh):
            for j in range(kw):
                hs, ws = i * d, j * d
                pats.append(xp[:, hs:hs + (Ho - 1) * s + 1:s,
                               ws:ws + (Wo - 1) * s + 1:s, :])
        cols = jnp.stack(pats, axis=3).reshape(N * Ho * Wo, kh * kw * Cin)
        wm = jnp.transpose(w, (2, 3, 1, 0)).reshape(kh * kw * Cin, Cout)
    return cols.astype(jnp.bfloat16), wm.astype(jnp.bfloat16), (N, Ho, Wo, Cout)


def _apply_bn(x2, scale, shift, *, relu=True, residual=None):
    """Apply per-channel scale/shift (+ReLU, +optional residual) lane-densely."""
    M, C = x2.shape
    f = 1
    if C % 128 != 0:
        cand = 128 // math.gcd(C, 128)     # fold rows so the last dim is 128-dense
        if M % cand == 0:
            f = cand
    Cf = C * f
    xr = x2.reshape(M // f, Cf)
    s2 = jnp.tile(scale.astype(jnp.float32), f).reshape(1, Cf)
    t2 = jnp.tile(shift.astype(jnp.float32), f).reshape(1, Cf)
    if residual is None:
        y = _bn_apply_call(xr, s2, t2, relu=relu)
    else:
        y = _bn_apply_res_call(xr, residual.reshape(M // f, Cf), s2, t2)
    return y.reshape(M, C)


def conv_bn(x, w, b, gamma, beta, *, stride=1, padding=0, dilation=1,
            relu=True, residual=None):
    """Conv2d + (training-mode) BatchNorm2d (+ReLU / +residual add+ReLU)."""
    cols, wm, (N, Ho, Wo, Cout) = _im2col(x, w, stride, padding, dilation)
    M = cols.shape[0]
    if b is None:
        b = jnp.zeros((Cout,), jnp.float32)
    out, sums, sqs = _mm(cols, wm, b, with_stats=True)
    out = out[:M, :Cout]
    mean = sums[0, :Cout] / M
    var = jnp.maximum(sqs[0, :Cout] / M - mean * mean, 0.0)   # biased var, clamped
    scale = gamma * lax.rsqrt(var + 1e-5)
    shift = beta - mean * scale
    res2 = None if residual is None else residual.reshape(M, Cout)
    y = _apply_bn(out, scale, shift, relu=relu, residual=res2)
    return y.reshape(N, Ho, Wo, Cout)


def max_pool_3x3_s2_p1(x):
    # 3x3-window max reduction stays as jnp glue (conv/matmul hot paths are Pallas).
    N, H, W, C = x.shape
    Ho = (H + 2 - 3) // 2 + 1
    Wo = (W + 2 - 3) // 2 + 1
    xp = jnp.pad(x, ((0, 0), (1, 1), (1, 1), (0, 0)), constant_values=-jnp.inf)
    out = None
    for i in range(3):
        for j in range(3):
            sl = xp[:, i:i + (Ho - 1) * 2 + 1:2, j:j + (Wo - 1) * 2 + 1:2, :]
            out = sl if out is None else jnp.maximum(out, sl)
    return out


def _bilinear_matrix(in_size, scale):
    out_size = in_size * scale
    o = np.arange(out_size, dtype=np.float64)
    src = np.maximum((o + 0.5) / scale - 0.5, 0.0)
    i0 = np.minimum(np.floor(src).astype(np.int64), in_size - 1)
    i1 = np.minimum(i0 + 1, in_size - 1)
    w1 = src - i0
    w0 = 1.0 - w1
    A = np.zeros((out_size, in_size), dtype=np.float32)
    A[np.arange(out_size), i0] += w0.astype(np.float32)
    A[np.arange(out_size), i1] += w1.astype(np.float32)
    return jnp.asarray(A)


def _avgpool_matrix(in_size, k):
    out_size = in_size // k
    A = np.zeros((out_size, in_size), dtype=np.float32)
    for i in range(out_size):
        A[i, i * k:(i + 1) * k] = 1.0 / k
    return jnp.asarray(A)


def _separable_spatial(x, Ah, Aw):
    # y[n,oh,ow,c] = sum_{h,w} Ah[oh,h] * Aw[ow,w] * x[n,h,w,c]   (N == 1)
    N, H, W, C = x.shape
    Ho, Wo = Ah.shape[0], Aw.shape[0]
    t = pallas_matmul(Ah, x[0].reshape(H, W * C))                 # (Ho, W*C)
    t = t.reshape(Ho, W, C).transpose(1, 0, 2).reshape(W, Ho * C)
    t = pallas_matmul(Aw, t)                                      # (Wo, Ho*C)
    return t.reshape(Wo, Ho, C).transpose(1, 0, 2)[None]


def upsample_bilinear(x, scale):
    return _separable_spatial(x, _bilinear_matrix(x.shape[1], scale),
                              _bilinear_matrix(x.shape[2], scale))


def avg_pool(x, k):
    return _separable_spatial(x, _avgpool_matrix(x.shape[1], k),
                              _avgpool_matrix(x.shape[2], k))


# ---------------------------------------------------------------------------
# Deterministic synthetic parameters (no checkpoint load)
# ---------------------------------------------------------------------------
def _make_rng(key):
    state = {"key": key}
    def nxt():
        state["key"], sub = jax.random.split(state["key"])
        return sub
    return nxt


def _conv_w(rng, cout, cin, k):
    fan_in = cin * k * k
    return (jax.random.normal(rng(), (cout, cin, k, k), jnp.float32)
            * np.float32(np.sqrt(2.0 / fan_in)))


def _conv_b(rng, cout, fan_in):
    bound = float(1.0 / np.sqrt(fan_in))
    return jax.random.uniform(rng(), (cout,), jnp.float32, minval=-bound, maxval=bound)


def _lin_w(rng, cout, cin):
    bound = float(1.0 / np.sqrt(cin))
    return jax.random.uniform(rng(), (cout, cin), jnp.float32, minval=-bound, maxval=bound)


def _bn_p(c):
    return jnp.ones((c,), jnp.float32), jnp.zeros((c,), jnp.float32)


def init_params(key, landmarks_num, pooled_feats, fnum=96):
    rng = _make_rng(key)
    p = {}
    p["conv1_w"] = _conv_w(rng, 64, 3, 7)
    p["bn1"] = _bn_p(64)

    def stage(cin, mid, cout, blocks, stride):
        blist = []
        for bidx in range(blocks):
            s = stride if bidx == 0 else 1
            ci = cin if bidx == 0 else cout
            blk = {"stride": s,
                   "w1": _conv_w(rng, mid, ci, 1), "bn1": _bn_p(mid),
                   "w2": _conv_w(rng, mid, mid, 3), "bn2": _bn_p(mid),
                   "w3": _conv_w(rng, cout, mid, 1), "bn3": _bn_p(cout)}
            if bidx == 0:
                blk["wd"] = _conv_w(rng, cout, ci, 1)
                blk["bnd"] = _bn_p(cout)
            blist.append(blk)
        return blist

    p["layer1"] = stage(64, 64, 256, 3, 1)
    p["layer2"] = stage(256, 128, 512, 4, 2)
    p["layer3"] = stage(512, 256, 1024, 6, 2)
    p["layer4"] = stage(1024, 512, 2048, 3, 2)

    for name, cin in (("f_conv1", 256), ("f_conv2", 512),
                      ("f_conv3", 1024), ("f_conv4", 2048)):
        g, bta = _bn_p(fnum)
        p[name] = {"w": _conv_w(rng, fnum, cin, 1), "b": _conv_b(rng, fnum, cin),
                   "gamma": g, "beta": bta}

    inc = []
    cin = fnum * 4
    for k in (1, 3, 3, 3):
        g, bta = _bn_p(fnum)
        inc.append({"w": _conv_w(rng, fnum, cin, k),
                    "b": _conv_b(rng, fnum, cin * k * k),
                    "gamma": g, "beta": bta})
    p["inception"] = inc

    # attentionLayer1 (in-features = (H/32)*(W/32); the PyTorch ctor hardcodes 500)
    p["att_w1"] = _lin_w(rng, 128, pooled_feats)
    p["att_bn"] = (jnp.ones((), jnp.float32), jnp.zeros((), jnp.float32))
    p["att_w2"] = _lin_w(rng, landmarks_num * 3, 128)

    p["module_w"] = jnp.stack(
        [_conv_w(rng, 1, fnum * 4, 1)[0, :, 0, 0] for _ in range(landmarks_num * 3)], 0)
    p["module_b"] = jnp.stack(
        [_conv_b(rng, 1, fnum * 4)[0] for _ in range(landmarks_num * 3)], 0)
    # self.prediction / self.scaleFactorList / inception.conv unused in forward().
    return p


# ---------------------------------------------------------------------------
# Forward pass
# ---------------------------------------------------------------------------
def _bottleneck(x, p):
    out = conv_bn(x, p["w1"], None, *p["bn1"])
    out = conv_bn(out, p["w2"], None, *p["bn2"], stride=p["stride"], padding=1)
    if "wd" in p:
        identity = conv_bn(x, p["wd"], None, *p["bnd"], stride=p["stride"], relu=False)
    else:
        identity = x
    cout = p["w3"].shape[0]
    return conv_bn(out, p["w3"], None, *p["bn3"],
                   residual=identity.reshape(-1, cout))


def _stage(x, blocks):
    for blk in blocks:
        x = _bottleneck(x, blk)
    return x


def _conv_bn_relu_head(x, p):
    return conv_bn(x, p["w"], p["b"], p["gamma"], p["beta"])


def _inception(x, branches):
    cfg = ((0, 1), (1, 1), (2, 2), (4, 4))   # (padding, dilation)
    outs = []
    for br, (pad, dil) in zip(branches, cfg):
        outs.append(conv_bn(x, br["w"], br["b"], br["gamma"], br["beta"],
                            padding=pad, dilation=dil))
    return jnp.concatenate(outs, axis=-1)


def _get_attention(bone, params, landmarks_num):
    fnum4 = bone.shape[-1]                                        # 384
    pooled = avg_pool(bone, 8)
    pooled = jnp.transpose(pooled[0], (2, 0, 1)).reshape(fnum4, -1)
    flat = pooled.shape[1]
    Fp = _round_up(flat, 128)
    pooled_pad = jnp.pad(pooled, ((0, 0), (0, Fp - flat)))
    w1t = jnp.pad(params["att_w1"].T, ((0, Fp - flat), (0, 0)))
    L3 = landmarks_num * 3
    L3p = _round_up(L3, 128)
    w2t = jnp.pad(params["att_w2"].T, ((0, 0), (0, L3p - L3)))
    bn_vec = jnp.stack([params["att_bn"][0], params["att_bn"][1]]).astype(jnp.float32)
    att = _attention_call(pooled_pad, w1t, w2t, bn_vec)[:, :L3]   # (384, L3)
    return att.T                                                  # (L3, 384)


def _prediction_with_attention(bone, attentions, params):
    # moduleList[i](attention_i.view(1,C,1,1) * bone * C) folded into one matmul.
    N, H1, W1, C = bone.shape
    w_eff = (float(C) * params["module_w"] * attentions).T        # (C, L3)
    out = pallas_matmul(bone.reshape(N * H1 * W1, C), w_eff, params["module_b"])
    return out.reshape(N, H1, W1, attentions.shape[0])


def fusion_resnet50_forward(params, x_nchw, landmarks_num):
    x = jnp.transpose(x_nchw.astype(jnp.float32), (0, 2, 3, 1))   # NCHW -> NHWC
    x = conv_bn(x, params["conv1_w"], None, *params["bn1"], stride=2, padding=3)
    x = max_pool_3x3_s2_p1(x)
    x = _stage(x, params["layer1"])
    f1 = _conv_bn_relu_head(x, params["f_conv1"])
    x = _stage(x, params["layer2"])
    f2 = _conv_bn_relu_head(x, params["f_conv2"])
    x = _stage(x, params["layer3"])
    f3 = _conv_bn_relu_head(x, params["f_conv3"])
    x = _stage(x, params["layer4"])
    f4 = _conv_bn_relu_head(x, params["f_conv4"])
    f2 = upsample_bilinear(f2, 2)
    f3 = upsample_bilinear(f3, 4)
    f4 = upsample_bilinear(f4, 8)
    bone = jnp.concatenate([f1, f2, f3, f4], axis=-1)             # (1, H/4, W/4, 384)
    bone = _inception(bone, params["inception"])
    attention = _get_attention(bone, params, landmarks_num)       # (L*3, 384)
    y = _prediction_with_attention(bone, attention, params)       # (1, H/4, W/4, L*3)
    y = upsample_bilinear(y, 4)                                   # (1, H, W, L*3)
    y = jnp.transpose(y, (0, 3, 1, 2))                            # back to NCHW
    coordinateMean1, coordinateMean2 = 0, 0
    return [y], coordinateMean1, coordinateMean2


# ---------------------------------------------------------------------------
if __name__ == "__main__":
    landmarks_num = 4
    # batch=1 is required by the module (squeeze()/unsqueeze(0) and the
    # BatchNorm1d(1) reshape); H, W must be multiples of 32.
    batch, H, W = 1, 64, 64
    root = jax.random.PRNGKey(0)
    k_params, k_x = jax.random.split(root)
    params = init_params(k_params, landmarks_num,
                         pooled_feats=(H // 32) * (W // 32))
    x = jax.random.normal(k_x, (batch, 3, H, W), jnp.float32)

    ys, cm1, cm2 = fusion_resnet50_forward(params, x, landmarks_num)
    y = jax.block_until_ready(ys[0])

    assert y.shape == (1, landmarks_num * 3, H, W), y.shape
    assert bool(jnp.isfinite(y).all())
    print("KERNEL_OK")
</pallas_src>

<mosaic_0001>
module attributes {stable_mosaic.version = 11 : i64} {
  func.func @_mm1_bn_kernel(%arg0: i32, %arg1: i32, %arg2: memref<512x256xbf16, #tpu.memory_space<vmem>>, %arg3: memref<256x128xbf16, #tpu.memory_space<vmem>>, %arg4: memref<1x128xf32, #tpu.memory_space<vmem>>, %arg5: memref<512x128xf32, #tpu.memory_space<vmem>>, %arg6: memref<1x128xf32, #tpu.memory_space<vmem>>, %arg7: memref<1x128xf32, #tpu.memory_space<vmem>>) attributes {dimension_semantics = [#tpu.dimension_semantics<parallel>, #tpu.dimension_semantics<arbitrary>], iteration_bounds = array<i64: 1, 2>, scalar_prefetch = 0 : i64, scratch_operands = 0 : i64, tpu.core_type = #tpu.core_type<tc>, window_params = [{transform_indices = @transform_0, window_bounds = array<i64: 512, 256>}, {transform_indices = @transform_1, window_bounds = array<i64: 256, 128>}, {transform_indices = @transform_2, window_bounds = array<i64: 1, 128>}, {transform_indices = @transform_3, window_bounds = array<i64: 512, 128>}, {transform_indices = @transform_4, window_bounds = array<i64: 1, 128>}, {transform_indices = @transform_5, window_bounds = array<i64: 1, 128>}]} {
    %c0 = arith.constant 0 : index
    %c0_0 = arith.constant 0 : index
    %0 = vector.load %arg2[%c0, %c0_0] : memref<512x256xbf16, #tpu.memory_space<vmem>>, vector<512x256xbf16>
    %c0_1 = arith.constant 0 : index
    %c0_2 = arith.constant 0 : index
    %1 = vector.load %arg3[%c0_1, %c0_2] : memref<256x128xbf16, #tpu.memory_space<vmem>>, vector<256x128xbf16>
    %cst = arith.constant dense<0.000000e+00> : vector<512x128xf32>
    %2 = tpu.matmul %0, %1, %cst {dimension_numbers = #tpu.dot_dimension_numbers<[1], [0], [0], [1], [0, 0, 1, 1], [], []>} : vector<512x256xbf16>, vector<256x128xbf16>, vector<512x128xf32> -> vector<512x128xf32>
    %c0_3 = arith.constant 0 : index
    %c0_4 = arith.constant 0 : index
    %3 = vector.load %arg4[%c0_3, %c0_4] : memref<1x128xf32, #tpu.memory_space<vmem>>, vector<1x128xf32>
    %4 = vector.broadcast %3 : vector<1x128xf32> to vector<512x128xf32>
    %5 = arith.addf %2, %4 : vector<512x128xf32>
    %c0_5 = arith.constant 0 : index
    %c0_6 = arith.constant 0 : index
    %6 = vector.load %arg5[%c0_5, %c0_6] : memref<512x128xf32, #tpu.memory_space<vmem>>, vector<512x128xf32>
    tpu.vector_store %arg5[%c0_5, %c0_6], %5 {strides = array<i32>} : memref<512x128xf32, #tpu.memory_space<vmem>>, vector<512x128xf32>,
    %c0_i32 = arith.constant 0 : i32
    %7 = arith.cmpi eq, %arg1, %c0_i32 : i32
    %8 = arith.extui %7 : i1 to i32
    %c0_i32_7 = arith.constant 0 : i32
    %9 = arith.cmpi ne, %8, %c0_i32_7 : i32
    scf.if %9 {
      %cst_19 = arith.constant 0.000000e+00 : f32
      %29 = vector.broadcast %cst_19 : f32 to vector<1x128xf32>
      %c0_20 = arith.constant 0 : index
      %c0_21 = arith.constant 0 : index
      %30 = vector.load %arg6[%c0_20, %c0_21] : memref<1x128xf32, #tpu.memory_space<vmem>>, vector<1x128xf32>
      tpu.vector_store %arg6[%c0_20, %c0_21], %29 {strides = array<i32>} : memref<1x128xf32, #tpu.memory_space<vmem>>, vector<1x128xf32>,
      %cst_22 = arith.constant 0.000000e+00 : f32
      %31 = vector.broadcast %cst_22 : f32 to vector<1x128xf32>
      %c0_23 = arith.constant 0 : index
      %c0_24 = arith.constant 0 : index
      %32 = vector.load %arg7[%c0_23, %c0_24] : memref<1x128xf32, #tpu.memory_space<vmem>>, vector<1x128xf32>
      tpu.vector_store %arg7[%c0_23, %c0_24], %31 {strides = array<i32>} : memref<1x128xf32, #tpu.memory_space<vmem>>, vector<1x128xf32>,
    } else {
    }
    %c512_i32 = arith.constant 512 : i32
    %10 = arith.muli %arg1, %c512_i32 : i32
    %11 = tpu.iota {dimensions = array<i32: 0>} : vector<512x128xi32>
    %12 = vector.broadcast %10 : i32 to vector<512x128xi32>
    %13 = arith.addi %12, %11 : vector<512x128xi32>
    %c1024_i32 = arith.constant 1024 : i32
    %14 = vector.broadcast %c1024_i32 : i32 to vector<512x128xi32>
    %15 = arith.cmpi slt, %13, %14 : vector<512x128xi32>
    %cst_8 = arith.constant 0.000000e+00 : f32
    %16 = vector.broadcast %cst_8 : f32 to vector<512x128xf32>
    %17 = arith.select %15, %5, %16 : vector<512x128xi1>, vector<512x128xf32>
    %c0_9 = arith.constant 0 : index
    %c0_10 = arith.constant 0 : index
    %18 = vector.load %arg6[%c0_9, %c0_10] : memref<1x128xf32, #tpu.memory_space<vmem>>, vector<1x128xf32>
    %cst_11 = arith.constant dense<0.000000e+00> : vector<128xf32>
    %19 = vector.multi_reduction <add>, %17, %cst_11 [0] : vector<512x128xf32> to vector<128xf32>
    %20 = vector.shape_cast %19 : vector<128xf32> to vector<1x128xf32>
    %21 = arith.addf %18, %20 : vector<1x128xf32>
    %c0_12 = arith.constant 0 : index
    %c0_13 = arith.constant 0 : index
    %22 = vector.load %arg6[%c0_12, %c0_13] : memref<1x128xf32, #tpu.memory_space<vmem>>, vector<1x128xf32>
    tpu.vector_store %arg6[%c0_12, %c0_13], %21 {strides = array<i32>} : memref<1x128xf32, #tpu.memory_space<vmem>>, vector<1x128xf32>,
    %c0_14 = arith.constant 0 : index
    %c0_15 = arith.constant 0 : index
    %23 = vector.load %arg7[%c0_14, %c0_15] : memref<1x128xf32, #tpu.memory_space<vmem>>, vector<1x128xf32>
    %24 = arith.mulf %17, %17 : vector<512x128xf32>
    %cst_16 = arith.constant dense<0.000000e+00> : vector<128xf32>
    %25 = vector.multi_reduction <add>, %24, %cst_16 [0] : vector<512x128xf32> to vector<128xf32>
    %26 = vector.shape_cast %25 : vector<128xf32> to vector<1x128xf32>
    %27 = arith.addf %23, %26 : vector<1x128xf32>
    %c0_17 = arith.constant 0 : index
    %c0_18 = arith.constant 0 : index
    %28 = vector.load %arg7[%c0_17, %c0_18] : memref<1x128xf32, #tpu.memory_space<vmem>>, vector<1x128xf32>
    tpu.vector_store %arg7[%c0_17, %c0_18], %27 {strides = array<i32>} : memref<1x128xf32, #tpu.memory_space<vmem>>, vector<1x128xf32>,
    return
  }
  func.func @transform_0(%arg0: i32, %arg1: i32) -> (i32, i32) {
    %c0_i32 = arith.constant 0 : i32
    %c0_i32_0 = arith.constant 0 : i32
    return %arg1, %c0_i32 : i32, i32
  }
  func.func @transform_1(%arg0: i32, %arg1: i32) -> (i32, i32) {
    %c0_i32 = arith.constant 0 : i32
    %c0_i32_0 = arith.constant 0 : i32
    return %c0_i32, %arg0 : i32, i32
  }
  func.func @transform_2(%arg0: i32, %arg1: i32) -> (i32, i32) {
    %c0_i32 = arith.constant 0 : i32
    %c0_i32_0 = arith.constant 0 : i32
    return %c0_i32, %arg0 : i32, i32
  }
  func.func @transform_3(%arg0: i32, %arg1: i32) -> (i32, i32) {
    %c0_i32 = arith.constant 0 : i32
    return %arg1, %arg0 : i32, i32
  }
  func.func @transform_4(%arg0: i32, %arg1: i32) -> (i32, i32) {
    %c0_i32 = arith.constant 0 : i32
    %c0_i32_0 = arith.constant 0 : i32
    return %c0_i32, %arg0 : i32, i32
  }
  func.func @transform_5(%arg0: i32, %arg1: i32) -> (i32, i32) {
    %c0_i32 = arith.constant 0 : i32
    %c0_i32_0 = arith.constant 0 : i32
    return %c0_i32, %arg0 : i32, i32
  }
}

</mosaic_0001>

<bundles_post_ra>
// kernel: _mm.1
= control target key start
LH: loop header
LB: loop body
LE: loop exit
PB: predicated region body
PF: predicated region fallthrough
CT: control target
= control target key end

     0   :  { %11 = vsyncpa [#allocation3], 0  ;;  %s3449_s0 = inlined_call_operand.vmem [shape: bf16[1024,256], index: 0, kind: input, shape index: {}]   ;;  %s3450_s1 = inlined_call_operand.vmem [shape: bf16[256,128], index: 1, kind: input, shape index: {}]   ;;  %s3451_s2 = inlined_call_operand.vmem [shape: f32[1,128], index: 2, kind: input, shape index: {}]   ;;  %s3452_s3 = inlined_call_operand.hbm [shape: f32[1024,128], index: 3, kind: output, shape index: {0}]   ;;  %s3453_s4 = inlined_call_operand.hbm [shape: f32[1,128], index: 4, kind: output, shape index: {1}]   ;;  %s3454_s5 = inlined_call_operand.hbm [shape: f32[1,128], index: 5, kind: output, shape index: {2}]  }
   0x1   :  { %13 = vsyncpa [#allocation3 + $0x1], 0 }
   0x2   :  { %14 = vsyncpa [#allocation5], 0  ;;  %s2526_s18 = smov 0   ;;  %s2528_s19 = smov 0  }
   0x3   :  { %s2530_s20 = smov 0   ;;  %s2532_s21 = smov 0  }
   0x4   :  { %s2534_s22 = smov 0   ;;  %s2536_s23 = smov 0  }
   0x5 LB: > { %s1838_s24 = sadd.s32 4294967295, %s2489_s23   ;;  %s1839_s25 = sadd.s32 4294967294, %s2489_s23   ;;  %s2489_s23 = sphi %s2536_s23, %s20_s23   ;;  %s2485_s22 = sphi %s2534_s22, %s3604_s22   ;;  %s2481_s21 = sphi %s2532_s21, %s3603_s21   ;;  %s2477_s20 = sphi %s2530_s20, %s3602_s20   ;;  %s2473_s19 = sphi %s2528_s19, %s3601_s19   ;;  %s2469_s18 = sphi %s2526_s18, %s3600_s18  }
   0x6   : > { %s29_s26 = sadd.s32 1, %s2485_s22  ;;  %s119_s27 = sadd.s32 1, %s2477_s20 }
   0x7   : > { %p30_p0 = scmp.ge.s32.totalorder %s29_s26, 2  ;;  %p129_p1 = scmp.ne.s32.totalorder %s2477_s20, %s2473_s19 }
   0x8   : > { %p2562_p2 = scmp.eq.s32.totalorder %s1838_s24, 1  ;;  %p135_p3 = scmp.ne.s32.totalorder %s2473_s19, %s2469_s18 }
   0x9   : > { %s3606_s26 = smov (%p30_p0, %s29_s26), 0  ;;  %p136_p5 = scmp.eq.s32.totalorder %s1839_s25, 1 }
   0xa   : > { %p2572_p4 = por %p2562_p2, %p129_p1  ;;  %s114_s30 = ssub.s32 %s2485_s22, %s3606_s26 }
   0xb   : > { %p1844_p6 = scmp.ge.s32.totalorder %s2489_s23, 1  ;;  %p117_p7 = scmp.eq.s32.totalorder %s114_s30, 0 }
   0xc   : > { %p2579_p8 = por %p136_p5, %p135_p3  ;;  %p229_p9 = scmp.lt.s32.totalorder %s2489_s23, 3 }
   0xd   : > { %s2585_s7 = scalar_select %p117_p7, %s2477_s20, %s119_s27  }
   0xe   : > { %p230_p10 = pnand %p1844_p6, %p229_p9 }
  0x10   : > { %233 = sbr.rel (%p230_p10) target bundleno = 621 (0x26d), region = 32 }
  0x15   : > { %v2252_v0 = vld [vmem:[%s3450_s1 + $0x38] sm:$0xff]  ;;  %v2251_v2 = vld [vmem:[%s3450_s1 + $0x30] sm:$0xff]  ;;  %v2250_v4 = vld [vmem:[%s3450_s1 + $0x28] sm:$0xff]  ;;  %s1846_s27 = sshll.u32 %s2481_s21, 6  ;;  %s258_s17 = sand.u32 1, %s2473_s19  }
  0x16   : > { %v2260_v1 = vld [vmem:[%s3450_s1 + $0x78] sm:$0xff]  ;;  %796 = vmatpush.bf16.msra.mxu0 %v2252_v0  ;;  %2262 = vmatpush.bf16.msra.mxu2 %v2252_v0  ;;  %v2259_v3 = vld [vmem:[%s3450_s1 + $0x70] sm:$0xff]  ;;  %v2258_v5 = vld [vmem:[%s3450_s1 + $0x68] sm:$0xff]  ;;  %p266_p11 = scmp.lt.s32.totalorder %s1846_s27, 127  ;;  %s1845_s30 = sshll.u32 %s258_s17, 9 }
  0x17   : > { %965 = vmatpush.bf16.msra.mxu1 %v2260_v1  ;;  %2270 = vmatpush.bf16.msra.mxu3 %v2260_v1  ;;  %v2249_v6 = vld [vmem:[%s3450_s1 + $0x20] sm:$0xff]  ;;  %v2248_v8 = vld [vmem:[%s3450_s1 + $0x18] sm:$0xff]  ;;  %v2247_v10 = vld [vmem:[%s3450_s1 + $0x10] sm:$0xff]  ;;  %s2724_s8 = scalar_lea.vmem [#allocation2], %s1845_s30  ;;  %p2169_p12 = scmp.ne.s32.totalorder %s2481_s21, 0 }
  0x18   : > { %v2257_v7 = vld [vmem:[%s3450_s1 + $0x60] sm:$0xff]  ;;  %v2256_v9 = vld [vmem:[%s3450_s1 + $0x58] sm:$0xff]  ;;  %s3608_s27 = smov (!%p266_p11, %s1846_s27), 127  ;;  %v2255_v11 = vld [vmem:[%s3450_s1 + $0x50] sm:$0xff] }
  0x19   : > { %s2180_s25 = sshll.u32 %s3608_s27, 3  ;;  %v2246_v12 = vld [vmem:[%s3450_s1 + $0x8] sm:$0xff]  ;;  %v2245_v14 = vld [vmem:[%s3450_s1] sm:$0xff] }
  0x1a   : > { %797 = vmatpush.bf16.msra.mxu0 %v2251_v2  ;;  %2263 = vmatpush.bf16.msra.mxu2 %v2251_v2  ;;  %s2630_s11 = scalar_lea.vmem %s3449_s0, %s2180_s25  ;;  %v2254_v13 = vld [vmem:[%s3450_s1 + $0x48] sm:$0xff]  ;;  %v2253_v15 = vld [vmem:[%s3450_s1 + $0x40] sm:$0xff] }
  0x1b   : > { %966 = vmatpush.bf16.msra.mxu1 %v2259_v3  ;;  %2271 = vmatpush.bf16.msra.mxu3 %v2259_v3  ;;  %v1851_v16 = vld [vmem:[%s2630_s11] sm:$0xf]  ;;  %v2182_v17 = vld [vmem:[%s2630_s11 + $0x4] sm:$0xf0]  ;;  %v2181_v20 = vld [vmem:[%s2630_s11 + $0x4] sm:$0xf] }
  0x1c   : > { %v1979_v18 = vld [vmem:[%s2630_s11 + $0x100] sm:$0xf]  ;;  %v2214_v19 = vld [vmem:[%s2630_s11 + $0x104] sm:$0xf0]  ;;  %v1853_v21 = vld [vmem:[%s2630_s11 + $0x8] sm:$0xf0]  ;;  %v1852_v24 = vor.u32 %v2182_v17, %v1851_v16 }
  0x1d   : > { %v2213_v22 = vld [vmem:[%s2630_s11 + $0x104] sm:$0xf]  ;;  %v1981_v23 = vld [vmem:[%s2630_s11 + $0x108] sm:$0xf0]  ;;  %v1980_v25 = vor.u32 %v2214_v19, %v1979_v18  ;;  %v1856_v26 = vor.u32 %v2181_v20, %v1853_v21  ;;  %v1859_v28 = vld [vmem:[%s2630_s11 + $0x10] sm:$0xf] }
  0x1e   : > { %798 = vmatpush.bf16.msra.mxu0 %v2250_v4  ;;  %2264 = vmatpush.bf16.msra.mxu2 %v2250_v4  ;;  %v1984_v27 = vor.u32 %v2213_v22, %v1981_v23  ;;  %v2184_v29 = vld [vmem:[%s2630_s11 + $0x14] sm:$0xf0]  ;;  %v1987_v30 = vld [vmem:[%s2630_s11 + $0x110] sm:$0xf]  ;;  %v2183_v32 = vld [vmem:[%s2630_s11 + $0x14] sm:$0xf] }
  0x1f   : > { %967 = vmatpush.bf16.msra.mxu1 %v2258_v5  ;;  %2272 = vmatpush.bf16.msra.mxu3 %v2258_v5  ;;  %v2216_v31 = vld [vmem:[%s2630_s11 + $0x114] sm:$0xf0]  ;;  %v1861_v33 = vld [vmem:[%s2630_s11 + $0x18] sm:$0xf0]  ;;  %v2215_v34 = vld [vmem:[%s2630_s11 + $0x114] sm:$0xf]  ;;  %v1860_v36 = vor.u32 %v2184_v29, %v1859_v28 }
  0x20   : > { %v1989_v35 = vld [vmem:[%s2630_s11 + $0x118] sm:$0xf0]  ;;  %v1988_v37 = vor.u32 %v2216_v31, %v1987_v30  ;;  %v1864_v38 = vor.u32 %v2183_v32, %v1861_v33  ;;  %v1867_v40 = vld [vmem:[%s2630_s11 + $0x20] sm:$0xf]  ;;  %v2186_v41 = vld [vmem:[%s2630_s11 + $0x24] sm:$0xf0] }
  0x21   : > { %v1992_v39 = vor.u32 %v2215_v34, %v1989_v35  ;;  %v1995_v42 = vld [vmem:[%s2630_s11 + $0x120] sm:$0xf]  ;;  %v2218_v43 = vld [vmem:[%s2630_s11 + $0x124] sm:$0xf0]  ;;  %v2185_v44 = vld [vmem:[%s2630_s11 + $0x24] sm:$0xf]  ;;  %v1868_v48 = vor.u32 %v2186_v41, %v1867_v40 }
  0x22   : > { %799 = vmatpush.bf16.msra.mxu0 %v2249_v6  ;;  %2265 = vmatpush.bf16.msra.mxu2 %v2249_v6  ;;  %v1869_v45 = vld [vmem:[%s2630_s11 + $0x28] sm:$0xf0]  ;;  %v2217_v46 = vld [vmem:[%s2630_s11 + $0x124] sm:$0xf]  ;;  %v1996_v49 = vor.u32 %v2218_v43, %v1995_v42  ;;  %v1875_v52 = vld [vmem:[%s2630_s11 + $0x30] sm:$0xf] }
  0x23   : > { %968 = vmatpush.bf16.msra.mxu1 %v2257_v7  ;;  %2273 = vmatpush.bf16.msra.mxu3 %v2257_v7  ;;  %v1997_v47 = vld [vmem:[%s2630_s11 + $0x128] sm:$0xf0]  ;;  %v1872_v50 = vor.u32 %v2185_v44, %v1869_v45  ;;  %v2188_v53 = vld [vmem:[%s2630_s11 + $0x34] sm:$0xf0]  ;;  %v2003_v54 = vld [vmem:[%s2630_s11 + $0x130] sm:$0xf] }
  0x24   : > { %v2000_v51 = vor.u32 %v2217_v46, %v1997_v47  ;;  %v2220_v55 = vld [vmem:[%s2630_s11 + $0x134] sm:$0xf0]  ;;  %v2187_v56 = vld [vmem:[%s2630_s11 + $0x34] sm:$0xf]  ;;  %v1877_v57 = vld [vmem:[%s2630_s11 + $0x38] sm:$0xf0]  ;;  %v1876_v60 = vor.u32 %v2188_v53, %v1875_v52 }
  0x25   : > { %v2219_v58 = vld [vmem:[%s2630_s11 + $0x134] sm:$0xf]  ;;  %v2005_v59 = vld [vmem:[%s2630_s11 + $0x138] sm:$0xf0]  ;;  %v2004_v61 = vor.u32 %v2220_v55, %v2003_v54  ;;  %v1880_v62 = vor.u32 %v2187_v56, %v1877_v57  ;;  %v1883_v0 = vld [vmem:[%s2630_s11 + $0x40] sm:$0xf] }
  0x26   : > { %800 = vmatpush.bf16.msra.mxu0 %v2248_v8  ;;  %2266 = vmatpush.bf16.msra.mxu2 %v2248_v8  ;;  %v2008_v63 = vor.u32 %v2219_v58, %v2005_v59  ;;  %v2190_v1 = vld [vmem:[%s2630_s11 + $0x44] sm:$0xf0]  ;;  %v2011_v2 = vld [vmem:[%s2630_s11 + $0x140] sm:$0xf]  ;;  %v2189_v4 = vld [vmem:[%s2630_s11 + $0x44] sm:$0xf] }
  0x27   : > { %969 = vmatpush.bf16.msra.mxu1 %v2256_v9  ;;  %2274 = vmatpush.bf16.msra.mxu3 %v2256_v9  ;;  %v2222_v3 = vld [vmem:[%s2630_s11 + $0x144] sm:$0xf0]  ;;  %v1885_v5 = vld [vmem:[%s2630_s11 + $0x48] sm:$0xf0]  ;;  %v2221_v6 = vld [vmem:[%s2630_s11 + $0x144] sm:$0xf]  ;;  %v1884_v8 = vor.u32 %v2190_v1, %v1883_v0 }
  0x28   : > { %v2013_v7 = vld [vmem:[%s2630_s11 + $0x148] sm:$0xf0]  ;;  %v2012_v9 = vor.u32 %v2222_v3, %v2011_v2  ;;  %v2191_v16 = vld [vmem:[%s2630_s11 + $0x54] sm:$0xf]  ;;  %v1893_v17 = vld [vmem:[%s2630_s11 + $0x58] sm:$0xf0] }
  0x29   : > { %v2223_v18 = vld [vmem:[%s2630_s11 + $0x154] sm:$0xf]  ;;  %v2021_v19 = vld [vmem:[%s2630_s11 + $0x158] sm:$0xf0]  ;;  %v1896_v22 = vor.u32 %v2191_v16, %v1893_v17  ;;  %v2193_v28 = vld [vmem:[%s2630_s11 + $0x64] sm:$0xf] }
  0x2a   : > { %801 = vmatpush.bf16.msra.mxu0 %v2247_v10  ;;  %2267 = vmatpush.bf16.msra.mxu2 %v2247_v10  ;;  %v1888_v10 = vor.u32 %v2189_v4, %v1885_v5  ;;  %v2024_v23 = vor.u32 %v2223_v18, %v2021_v19  ;;  %v1901_v29 = vld [vmem:[%s2630_s11 + $0x68] sm:$0xf0]  ;;  %v2225_v30 = vld [vmem:[%s2630_s11 + $0x164] sm:$0xf]  ;;  %v2195_v40 = vld [vmem:[%s2630_s11 + $0x74] sm:$0xf] }
  0x2b   : > { %970 = vmatpush.bf16.msra.mxu1 %v2255_v11  ;;  %2275 = vmatpush.bf16.msra.mxu3 %v2255_v11  ;;  %v2016_v11 = vor.u32 %v2221_v6, %v2013_v7  ;;  %v2029_v31 = vld [vmem:[%s2630_s11 + $0x168] sm:$0xf0]  ;;  %v1904_v34 = vor.u32 %v2193_v28, %v1901_v29  ;;  %v1909_v41 = vld [vmem:[%s2630_s11 + $0x78] sm:$0xf0]  ;;  %v2227_v42 = vld [vmem:[%s2630_s11 + $0x174] sm:$0xf] }
  0x2c   : > { %v2032_v35 = vor.u32 %v2225_v30, %v2029_v31  ;;  %v2037_v43 = vld [vmem:[%s2630_s11 + $0x178] sm:$0xf0]  ;;  %v1912_v46 = vor.u32 %v2195_v40, %v1909_v41  ;;  %v2230_v52 = vld [vmem:[%s2630_s11 + $0x184] sm:$0xf0]  ;;  %v2197_v53 = vld [vmem:[%s2630_s11 + $0x84] sm:$0xf] }
  0x2d   : > { %v2040_v47 = vor.u32 %v2227_v42, %v2037_v43  ;;  %v1917_v54 = vld [vmem:[%s2630_s11 + $0x88] sm:$0xf0]  ;;  %v2229_v55 = vld [vmem:[%s2630_s11 + $0x184] sm:$0xf]  ;;  %v2053_v16 = vld [vmem:[%s2630_s11 + $0x198] sm:$0xf0] }
  0x2e   : > { %802 = vmatpush.bf16.msra.mxu0 %v2246_v12  ;;  %2268 = vmatpush.bf16.msra.mxu2 %v2246_v12  ;;  %v1891_v12 = vld [vmem:[%s2630_s11 + $0x50] sm:$0xf]  ;;  %v2045_v56 = vld [vmem:[%s2630_s11 + $0x188] sm:$0xf0]  ;;  %v2234_v40 = vld [vmem:[%s2630_s11 + $0x1a4] sm:$0xf0] }
  0x2f   : > { %971 = vmatpush.bf16.msra.mxu1 %v2254_v13  ;;  %2276 = vmatpush.bf16.msra.mxu3 %v2254_v13  ;;  %v2192_v13 = vld [vmem:[%s2630_s11 + $0x54] sm:$0xf0]  ;;  %v2201_v41 = vld [vmem:[%s2630_s11 + $0xa4] sm:$0xf]  ;;  %v1933_v42 = vld [vmem:[%s2630_s11 + $0xa8] sm:$0xf0] }
  0x30   : > { %v1892_v20 = vor.u32 %v2192_v13, %v1891_v12  ;;  %v2232_v12 = vld [vmem:[%s2630_s11 + $0x194] sm:$0xf0]  ;;  %v2199_v13 = vld [vmem:[%s2630_s11 + $0x94] sm:$0xf]  ;;  %v2233_v43 = vld [vmem:[%s2630_s11 + $0x1a4] sm:$0xf] }
  0x32   : > { %803 = vmatpush.bf16.msra.mxu0 %v2245_v14  ;;  %2269 = vmatpush.bf16.msra.mxu2 %v2245_v14  ;;  %v2019_v14 = vld [vmem:[%s2630_s11 + $0x150] sm:$0xf] }
  0x33   : > { %972 = vmatpush.bf16.msra.mxu1 %v2253_v15  ;;  %2277 = vmatpush.bf16.msra.mxu3 %v2253_v15  ;;  %v2224_v15 = vld [vmem:[%s2630_s11 + $0x154] sm:$0xf0] }
  0x34   : > { %v2020_v21 = vor.u32 %v2224_v15, %v2019_v14  ;;  %v1925_v14 = vld [vmem:[%s2630_s11 + $0x98] sm:$0xf0]  ;;  %v2231_v15 = vld [vmem:[%s2630_s11 + $0x194] sm:$0xf] }
  0x35   : > { %804 = vmatmul.bf16.vlgmr.msra.gmra.mxu0 %v1852_v24  ;;  %884 = vmatmul.bf16.vlgmr.msra.gmra.mxu2 %v1980_v25  ;;  %v1899_v24 = vld [vmem:[%s2630_s11 + $0x60] sm:$0xf]  ;;  %v2194_v25 = vld [vmem:[%s2630_s11 + $0x64] sm:$0xf0] }
  0x36   : > { %973 = vmatmul.bf16.vlgmr.msra.gmra.mxu1 %v1856_v26  ;;  %1053 = vmatmul.bf16.vlgmr.msra.gmra.mxu3 %v1984_v27  ;;  %v2027_v26 = vld [vmem:[%s2630_s11 + $0x160] sm:$0xf]  ;;  %v2226_v27 = vld [vmem:[%s2630_s11 + $0x164] sm:$0xf0]  ;;  %v1900_v32 = vor.u32 %v2194_v25, %v1899_v24  ;;  %v2056_v24 = vor.u32 %v2231_v15, %v2053_v16 }
  0x37   : > { %v2028_v33 = vor.u32 %v2226_v27, %v2027_v26 }
  0x45   : > { %809 = vmatmul.bf16.gmra.mxu0 %v1860_v36  ;;  %889 = vmatmul.bf16.gmra.mxu2 %v1988_v37  ;;  %v1907_v36 = vld [vmem:[%s2630_s11 + $0x70] sm:$0xf]  ;;  %v2196_v37 = vld [vmem:[%s2630_s11 + $0x74] sm:$0xf0] }
  0x46   : > { %978 = vmatmul.bf16.gmra.mxu1 %v1864_v38  ;;  %1058 = vmatmul.bf16.gmra.mxu3 %v1992_v39  ;;  %v2035_v38 = vld [vmem:[%s2630_s11 + $0x170] sm:$0xf]  ;;  %v2228_v39 = vld [vmem:[%s2630_s11 + $0x174] sm:$0xf0]  ;;  %v1908_v44 = vor.u32 %v2196_v37, %v1907_v36  ;;  %v1931_v36 = vld [vmem:[%s2630_s11 + $0xa0] sm:$0xf] }
  0x47   : > { %v2036_v45 = vor.u32 %v2228_v39, %v2035_v38  ;;  %v2202_v38 = vld [vmem:[%s2630_s11 + $0xa4] sm:$0xf0]  ;;  %v2059_v39 = vld [vmem:[%s2630_s11 + $0x1a0] sm:$0xf] }
  0x55   : > { %814 = vmatmul.bf16.gmra.mxu0 %v1868_v48  ;;  %894 = vmatmul.bf16.gmra.mxu2 %v1996_v49  ;;  %v2709_v48 = vld [vmem:[%s3451_s2] ss:$0 sm:$0xff] }
  0x56   : > { %983 = vmatmul.bf16.gmra.mxu1 %v1872_v50  ;;  %1063 = vmatmul.bf16.gmra.mxu3 %v2000_v51  ;;  %v1915_v49 = vld [vmem:[%s2630_s11 + $0x80] sm:$0xf]  ;;  %v2198_v50 = vld [vmem:[%s2630_s11 + $0x84] sm:$0xf0] }
  0x57   : > { %v2043_v51 = vld [vmem:[%s2630_s11 + $0x180] sm:$0xf]  ;;  %v1916_v57 = vor.u32 %v2198_v50, %v1915_v49  ;;  %v1932_v49 = vor.u32 %v2202_v38, %v1931_v36  ;;  %v2060_v50 = vor.u32 %v2234_v40, %v2059_v39  ;;  %v2206_v38 = vld [vmem:[%s2630_s11 + $0xc4] sm:$0xf0] }
  0x58   : > { %v2044_v58 = vor.u32 %v2230_v52, %v2043_v51  ;;  %v1936_v52 = vor.u32 %v2201_v41, %v1933_v42  ;;  %v2075_v39 = vld [vmem:[%s2630_s11 + $0x1c0] sm:$0xf]  ;;  %v2238_v40 = vld [vmem:[%s2630_s11 + $0x1c4] sm:$0xf0]  ;;  %v2205_v41 = vld [vmem:[%s2630_s11 + $0xc4] sm:$0xf] }
  0x59   : > { %v1949_v42 = vld [vmem:[%s2630_s11 + $0xc8] sm:$0xf0] }
  0x65   : > { %819 = vmatmul.bf16.gmra.mxu0 %v1876_v60  ;;  %899 = vmatmul.bf16.gmra.mxu2 %v2004_v61  ;;  %v1920_v60 = vor.u32 %v2197_v53, %v1917_v54  ;;  %v2048_v61 = vor.u32 %v2229_v55, %v2045_v56 }
  0x66   : > { %988 = vmatmul.bf16.gmra.mxu1 %v1880_v62  ;;  %1068 = vmatmul.bf16.gmra.mxu3 %v2008_v63 }
  0x75   : > { %824 = vmatmul.bf16.gmra.mxu0 %v1884_v8  ;;  %904 = vmatmul.bf16.gmra.mxu2 %v2012_v9  ;;  %v1923_v8 = vld [vmem:[%s2630_s11 + $0x90] sm:$0xf] }
  0x76   : > { %993 = vmatmul.bf16.gmra.mxu1 %v1888_v10  ;;  %1073 = vmatmul.bf16.gmra.mxu3 %v2016_v11  ;;  %v2200_v10 = vld [vmem:[%s2630_s11 + $0x94] sm:$0xf0]  ;;  %v2051_v11 = vld [vmem:[%s2630_s11 + $0x190] sm:$0xf] }
  0x85   : > { %829 = vmatmul.bf16.gmra.mxu0 %v1892_v20  ;;  %909 = vmatmul.bf16.gmra.mxu2 %v2020_v21  ;;  %v1924_v20 = vor.u32 %v2200_v10, %v1923_v8  ;;  %v2052_v21 = vor.u32 %v2232_v12, %v2051_v11  ;;  %v2203_v8 = vld [vmem:[%s2630_s11 + $0xb4] sm:$0xf]  ;;  %v1941_v10 = vld [vmem:[%s2630_s11 + $0xb8] sm:$0xf0] }
  0x86   : > { %998 = vmatmul.bf16.gmra.mxu1 %v1896_v22  ;;  %1078 = vmatmul.bf16.gmra.mxu3 %v2024_v23  ;;  %v1928_v23 = vor.u32 %v2199_v13, %v1925_v14  ;;  %v2235_v11 = vld [vmem:[%s2630_s11 + $0x1b4] sm:$0xf]  ;;  %v2069_v12 = vld [vmem:[%s2630_s11 + $0x1b8] sm:$0xf0] }
  0x95   : > { %834 = vmatmul.bf16.gmra.mxu0 %v1900_v32  ;;  %914 = vmatmul.bf16.gmra.mxu2 %v2028_v33 }
  0x96   : > { %1003 = vmatmul.bf16.gmra.mxu1 %v1904_v34  ;;  %1083 = vmatmul.bf16.gmra.mxu3 %v2032_v35 }
  0xa5   : > { %839 = vmatmul.bf16.gmra.mxu0 %v1908_v44  ;;  %919 = vmatmul.bf16.gmra.mxu2 %v2036_v45  ;;  %v2061_v44 = vld [vmem:[%s2630_s11 + $0x1a8] sm:$0xf0] }
  0xa6   : > { %1008 = vmatmul.bf16.gmra.mxu1 %v1912_v46  ;;  %1088 = vmatmul.bf16.gmra.mxu3 %v2040_v47  ;;  %v2064_v53 = vor.u32 %v2233_v43, %v2061_v44  ;;  %v2237_v43 = vld [vmem:[%s2630_s11 + $0x1c4] sm:$0xf]  ;;  %v2077_v44 = vld [vmem:[%s2630_s11 + $0x1c8] sm:$0xf0] }
  0xb2   : > { %v805_v59 = vpop.f32.mrf.mxu0 }
  0xb3   : > { %v806_v62 = vadd.f32 %v2709_v48, %v805_v59  ;;  %v974_v63 = vpop.f32.mrf.mxu1 }
  0xb5   : > { %v2722_v0 = vadd.f32 %v974_v63, %v806_v62  ;;  %844 = vmatmul.bf16.gmra.mxu0 %v1916_v57  ;;  %924 = vmatmul.bf16.gmra.mxu2 %v2044_v58 }
  0xb6   : > { %1013 = vmatmul.bf16.gmra.mxu1 %v1920_v60  ;;  %1093 = vmatmul.bf16.gmra.mxu3 %v2048_v61 }
  0xb7   : > { %1134 = vst [vmem:[%s2724_s8] sm:$0xff] %v2722_v0 }
  0xb8   : > { %v885_v1 = vpop.f32.mrf.mxu2 }
  0xb9   : > { %v886_v2 = vadd.f32 %v2709_v48, %v885_v1  ;;  %v1054_v3 = vpop.f32.mrf.mxu3 }
  0xba   : > { %v807_v4 = vpop.f32.mrf.mxu0 }
  0xbb   : > { %v2729_v5 = vadd.f32 %v1054_v3, %v886_v2  ;;  %v808_v6 = vadd.f32 %v2709_v48, %v807_v4  ;;  %v976_v7 = vpop.f32.mrf.mxu1  ;;  %v1939_v2 = vld [vmem:[%s2630_s11 + $0xb0] sm:$0xf]  ;;  %v2204_v4 = vld [vmem:[%s2630_s11 + $0xb4] sm:$0xf0] }
  0xbc   : > { %v1940_v16 = vor.u32 %v2204_v4, %v1939_v2 }
  0xbd   : > { %3498 = vst [vmem:[#allocation9_spill] sm:$0xff] %v2729_v5  ;;  %v2735_v9 = vadd.f32 %v976_v7, %v808_v6  ;;  %v2067_v6 = vld [vmem:[%s2630_s11 + $0x1b0] sm:$0xf]  ;;  %v2236_v7 = vld [vmem:[%s2630_s11 + $0x1b4] sm:$0xf0] }
  0xbe   : > { %1166 = vst [vmem:[%s2724_s8 + $0x100] sm:$0xff] %v2729_v5 }
  0xbf   : > { %1135 = vst [vmem:[%s2724_s8 + $0x8] sm:$0xff] %v2735_v9 }
  0xc0   : > { %v887_v17 = vpop.f32.mrf.mxu2 }
  0xc1   : > { %v888_v18 = vadd.f32 %v2709_v48, %v887_v17  ;;  %v1056_v19 = vpop.f32.mrf.mxu3  ;;  %v2068_v17 = vor.u32 %v2236_v7, %v2067_v6  ;;  %v1955_v7 = vld [vmem:[%s2630_s11 + $0xd0] sm:$0xf] }
  0xc2   : > { %v810_v22 = vpop.f32.mrf.mxu0 }
  0xc3   : > { %v2747_v25 = vadd.f32 %v1056_v19, %v888_v18  ;;  %v811_v26 = vadd.f32 %v2709_v48, %v810_v22  ;;  %v979_v27 = vpop.f32.mrf.mxu1  ;;  %v1944_v19 = vor.u32 %v2203_v8, %v1941_v10  ;;  %v2208_v10 = vld [vmem:[%s2630_s11 + $0xd4] sm:$0xf0] }
  0xc5   : > { %3499 = vst [vmem:[#allocation10_spill] sm:$0xff] %v2747_v25  ;;  %v2752_v28 = vadd.f32 %v979_v27, %v811_v26  ;;  %849 = vmatmul.bf16.gmra.mxu0 %v1924_v20  ;;  %929 = vmatmul.bf16.gmra.mxu2 %v2052_v21  ;;  %v2072_v20 = vor.u32 %v2235_v11, %v2069_v12  ;;  %v2083_v11 = vld [vmem:[%s2630_s11 + $0x1d0] sm:$0xf]  ;;  %v2240_v12 = vld [vmem:[%s2630_s11 + $0x1d4] sm:$0xf0] }
  0xc6   : > { %1167 = vst [vmem:[%s2724_s8 + $0x108] sm:$0xff] %v2747_v25  ;;  %1018 = vmatmul.bf16.gmra.mxu1 %v1928_v23  ;;  %1098 = vmatmul.bf16.gmra.mxu3 %v2056_v24 }
  0xc7   : > { %1136 = vst [vmem:[%s2724_s8 + $0x10] sm:$0xff] %v2752_v28 }
  0xc8   : > { %v890_v29 = vpop.f32.mrf.mxu2 }
  0xc9   : > { %v891_v30 = vadd.f32 %v2709_v48, %v890_v29  ;;  %v1059_v31 = vpop.f32.mrf.mxu3 }
  0xca   : > { %v812_v32 = vpop.f32.mrf.mxu0 }
  0xcb   : > { %v2757_v33 = vadd.f32 %v1059_v31, %v891_v30  ;;  %v813_v34 = vadd.f32 %v2709_v48, %v812_v32  ;;  %v981_v35 = vpop.f32.mrf.mxu1 }
  0xcd   : > { %3500 = vst [vmem:[#allocation11_spill] sm:$0xff] %v2757_v33  ;;  %v2763_v37 = vadd.f32 %v981_v35, %v813_v34  ;;  %v1947_v35 = vld [vmem:[%s2630_s11 + $0xc0] sm:$0xf] }
  0xce   : > { %1168 = vst [vmem:[%s2724_s8 + $0x110] sm:$0xff] %v2757_v33 }
  0xcf   : > { %1137 = vst [vmem:[%s2724_s8 + $0x18] sm:$0xff] %v2763_v37 }
  0xd0   : > { %v892_v45 = vpop.f32.mrf.mxu2 }
  0xd1   : > { %v893_v46 = vadd.f32 %v2709_v48, %v892_v45  ;;  %v1061_v47 = vpop.f32.mrf.mxu3 }
  0xd2   : > { %v815_v51 = vpop.f32.mrf.mxu0 }
  0xd3   : > { %v2775_v54 = vadd.f32 %v1061_v47, %v893_v46  ;;  %v816_v55 = vadd.f32 %v2709_v48, %v815_v51  ;;  %v984_v56 = vpop.f32.mrf.mxu1 }
  0xd5   : > { %3501 = vst [vmem:[#allocation12_spill] sm:$0xff] %v2775_v54  ;;  %v2780_v57 = vadd.f32 %v984_v56, %v816_v55  ;;  %854 = vmatmul.bf16.gmra.mxu0 %v1932_v49  ;;  %934 = vmatmul.bf16.gmra.mxu2 %v2060_v50  ;;  %v1948_v49 = vor.u32 %v2206_v38, %v1947_v35 }
  0xd6   : > { %1169 = vst [vmem:[%s2724_s8 + $0x118] sm:$0xff] %v2775_v54  ;;  %1023 = vmatmul.bf16.gmra.mxu1 %v1936_v52  ;;  %1103 = vmatmul.bf16.gmra.mxu3 %v2064_v53  ;;  %v2076_v50 = vor.u32 %v2238_v40, %v2075_v39  ;;  %v1952_v52 = vor.u32 %v2205_v41, %v1949_v42 }
  0xd7   : > { %1138 = vst [vmem:[%s2724_s8 + $0x20] sm:$0xff] %v2780_v57  ;;  %v2080_v53 = vor.u32 %v2237_v43, %v2077_v44  ;;  %v1963_v44 = vld [vmem:[%s2630_s11 + $0xe0] sm:$0xf] }
  0xd8   : > { %v895_v58 = vpop.f32.mrf.mxu2 }
  0xd9   : > { %v896_v59 = vadd.f32 %v2709_v48, %v895_v58  ;;  %v1064_v60 = vpop.f32.mrf.mxu3 }
  0xda   : > { %v817_v61 = vpop.f32.mrf.mxu0 }
  0xdb   : > { %v2785_v62 = vadd.f32 %v1064_v60, %v896_v59  ;;  %v818_v63 = vadd.f32 %v2709_v48, %v817_v61  ;;  %v986_v1 = vpop.f32.mrf.mxu1 }
  0xdd   : > { %3502 = vst [vmem:[#allocation13_spill] sm:$0xff] %v2785_v62  ;;  %v2791_v3 = vadd.f32 %v986_v1, %v818_v63 }
  0xde   : > { %1170 = vst [vmem:[%s2724_s8 + $0x120] sm:$0xff] %v2785_v62 }
  0xdf   : > { %1139 = vst [vmem:[%s2724_s8 + $0x28] sm:$0xff] %v2791_v3 }
  0xe0   : > { %v897_v13 = vpop.f32.mrf.mxu2 }
  0xe1   : > { %v898_v14 = vadd.f32 %v2709_v48, %v897_v13  ;;  %v1066_v15 = vpop.f32.mrf.mxu3  ;;  %v2207_v13 = vld [vmem:[%s2630_s11 + $0xd4] sm:$0xf] }
  0xe2   : > { %v820_v18 = vpop.f32.mrf.mxu0 }
  0xe3   : > { %v2803_v21 = vadd.f32 %v1066_v15, %v898_v14  ;;  %v821_v22 = vadd.f32 %v2709_v48, %v820_v18  ;;  %v989_v23 = vpop.f32.mrf.mxu1  ;;  %v1957_v14 = vld [vmem:[%s2630_s11 + $0xd8] sm:$0xf0]  ;;  %v2239_v15 = vld [vmem:[%s2630_s11 + $0x1d4] sm:$0xf] }
  0xe5   : > { %3503 = vst [vmem:[#allocation14_spill] sm:$0xff] %v2803_v21  ;;  %v2808_v24 = vadd.f32 %v989_v23, %v821_v22  ;;  %859 = vmatmul.bf16.gmra.mxu0 %v1940_v16  ;;  %939 = vmatmul.bf16.gmra.mxu2 %v2068_v17  ;;  %v2085_v16 = vld [vmem:[%s2630_s11 + $0x1d8] sm:$0xf0]  ;;  %v2084_v22 = vor.u32 %v2240_v12, %v2083_v11 }
  0xe6   : > { %1171 = vst [vmem:[%s2724_s8 + $0x128] sm:$0xff] %v2803_v21  ;;  %1028 = vmatmul.bf16.gmra.mxu1 %v1944_v19  ;;  %1108 = vmatmul.bf16.gmra.mxu3 %v2072_v20  ;;  %v1956_v20 = vor.u32 %v2208_v10, %v1955_v7 }
  0xe7   : > { %1140 = vst [vmem:[%s2724_s8 + $0x30] sm:$0xff] %v2808_v24 }
  0xe8   : > { %v900_v26 = vpop.f32.mrf.mxu2 }
  0xe9   : > { %v901_v27 = vadd.f32 %v2709_v48, %v900_v26  ;;  %v1069_v29 = vpop.f32.mrf.mxu3  ;;  %v1960_v26 = vor.u32 %v2207_v13, %v1957_v14 }
  0xea   : > { %v822_v30 = vpop.f32.mrf.mxu0 }
  0xeb   : > { %v2813_v31 = vadd.f32 %v1069_v29, %v901_v27  ;;  %v823_v32 = vadd.f32 %v2709_v48, %v822_v30  ;;  %v991_v34 = vpop.f32.mrf.mxu1  ;;  %v2088_v27 = vor.u32 %v2239_v15, %v2085_v16 }
  0xed   : > { %3504 = vst [vmem:[#allocation15_spill] sm:$0xff] %v2813_v31  ;;  %v2819_v36 = vadd.f32 %v991_v34, %v823_v32 }
  0xee   : > { %1172 = vst [vmem:[%s2724_s8 + $0x130] sm:$0xff] %v2813_v31 }
  0xef   : > { %1141 = vst [vmem:[%s2724_s8 + $0x38] sm:$0xff] %v2819_v36 }
  0xf0   : > { %v902_v45 = vpop.f32.mrf.mxu2 }
  0xf1   : > { %v903_v46 = vadd.f32 %v2709_v48, %v902_v45  ;;  %v1071_v47 = vpop.f32.mrf.mxu3 }
  0xf2   : > { %v825_v51 = vpop.f32.mrf.mxu0 }
  0xf3   : > { %v2831_v55 = vadd.f32 %v1071_v47, %v903_v46  ;;  %v826_v56 = vadd.f32 %v2709_v48, %v825_v51  ;;  %v994_v58 = vpop.f32.mrf.mxu1  ;;  %v2210_v46 = vld [vmem:[%s2630_s11 + $0xe4] sm:$0xf0]  ;;  %v2091_v47 = vld [vmem:[%s2630_s11 + $0x1e0] sm:$0xf]  ;;  %v1965_v51 = vld [vmem:[%s2630_s11 + $0xe8] sm:$0xf0] }
  0xf5   : > { %3505 = vst [vmem:[#allocation16_spill] sm:$0xff] %v2831_v55  ;;  %v2836_v59 = vadd.f32 %v994_v58, %v826_v56  ;;  %864 = vmatmul.bf16.gmra.mxu0 %v1948_v49  ;;  %944 = vmatmul.bf16.gmra.mxu2 %v2076_v50  ;;  %v2242_v49 = vld [vmem:[%s2630_s11 + $0x1e4] sm:$0xf0]  ;;  %v2209_v50 = vld [vmem:[%s2630_s11 + $0xe4] sm:$0xf] }
  0xf6   : > { %1173 = vst [vmem:[%s2724_s8 + $0x138] sm:$0xff] %v2831_v55  ;;  %1033 = vmatmul.bf16.gmra.mxu1 %v1952_v52  ;;  %1113 = vmatmul.bf16.gmra.mxu3 %v2080_v53  ;;  %v2241_v52 = vld [vmem:[%s2630_s11 + $0x1e4] sm:$0xf]  ;;  %v2093_v53 = vld [vmem:[%s2630_s11 + $0x1e8] sm:$0xf0] }
  0xf7   : > { %1142 = vst [vmem:[%s2724_s8 + $0x40] sm:$0xff] %v2836_v59 }
  0xf8   : > { %v905_v60 = vpop.f32.mrf.mxu2 }
  0xf9   : > { %v906_v61 = vadd.f32 %v2709_v48, %v905_v60  ;;  %v1074_v63 = vpop.f32.mrf.mxu3 }
  0xfa   : > { %v827_v1 = vpop.f32.mrf.mxu0 }
  0xfb   : > { %v2841_v2 = vadd.f32 %v1074_v63, %v906_v61  ;;  %v828_v4 = vadd.f32 %v2709_v48, %v827_v1  ;;  %v996_v6 = vpop.f32.mrf.mxu1  ;;  %v1964_v61 = vor.u32 %v2210_v46, %v1963_v44  ;;  %v2092_v63 = vor.u32 %v2242_v49, %v2091_v47 }
  0xfd   : > { %3506 = vst [vmem:[#allocation17_spill] sm:$0xff] %v2841_v2  ;;  %v2847_v8 = vadd.f32 %v996_v6, %v828_v4  ;;  %v1968_v4 = vor.u32 %v2209_v50, %v1965_v51  ;;  %v2096_v6 = vor.u32 %v2241_v52, %v2093_v53 }
  0xfe   : > { %1174 = vst [vmem:[%s2724_s8 + $0x140] sm:$0xff] %v2841_v2 }
  0xff   : > { %1143 = vst [vmem:[%s2724_s8 + $0x48] sm:$0xff] %v2847_v8 }
 0x100   : > { %v907_v17 = vpop.f32.mrf.mxu2 }
 0x101   : > { %v908_v18 = vadd.f32 %v2709_v48, %v907_v17  ;;  %v1076_v19 = vpop.f32.mrf.mxu3 }
 0x102   : > { %v830_v23 = vpop.f32.mrf.mxu0 }
 0x103   : > { %v2859_v29 = vadd.f32 %v1076_v19, %v908_v18  ;;  %v831_v30 = vadd.f32 %v2709_v48, %v830_v23  ;;  %v999_v32 = vpop.f32.mrf.mxu1  ;;  %v2212_v23 = vld [vmem:[%s2630_s11 + $0xf4] sm:$0xf0] }
 0x105   : > { %3507 = vst [vmem:[#allocation18_spill] sm:$0xff] %v2859_v29  ;;  %v2864_v34 = vadd.f32 %v999_v32, %v831_v30  ;;  %869 = vmatmul.bf16.gmra.mxu0 %v1956_v20  ;;  %949 = vmatmul.bf16.gmra.mxu2 %v2084_v22  ;;  %v1971_v20 = vld [vmem:[%s2630_s11 + $0xf0] sm:$0xf]  ;;  %v2211_v30 = vld [vmem:[%s2630_s11 + $0xf4] sm:$0xf] }
 0x106   : > { %1175 = vst [vmem:[%s2724_s8 + $0x148] sm:$0xff] %v2859_v29  ;;  %1038 = vmatmul.bf16.gmra.mxu1 %v1960_v26  ;;  %1118 = vmatmul.bf16.gmra.mxu3 %v2088_v27  ;;  %v2099_v26 = vld [vmem:[%s2630_s11 + $0x1f0] sm:$0xf]  ;;  %v2244_v27 = vld [vmem:[%s2630_s11 + $0x1f4] sm:$0xf0] }
 0x107   : > { %1144 = vst [vmem:[%s2724_s8 + $0x50] sm:$0xff] %v2864_v34  ;;  %v1973_v32 = vld [vmem:[%s2630_s11 + $0xf8] sm:$0xf0]  ;;  %v2100_v44 = vor.u32 %v2244_v27, %v2099_v26 }
 0x108   : > { %v910_v35 = vpop.f32.mrf.mxu2  ;;  %v1976_v47 = vor.u32 %v2211_v30, %v1973_v32 }
 0x109   : > { %v911_v38 = vadd.f32 %v2709_v48, %v910_v35  ;;  %v1079_v39 = vpop.f32.mrf.mxu3  ;;  %v2243_v35 = vld [vmem:[%s2630_s11 + $0x1f4] sm:$0xf] }
 0x10a   : > { %v832_v40 = vpop.f32.mrf.mxu0 }
 0x10b   : > { %v2869_v41 = vadd.f32 %v1079_v39, %v911_v38  ;;  %v833_v42 = vadd.f32 %v2709_v48, %v832_v40  ;;  %v1001_v43 = vpop.f32.mrf.mxu1  ;;  %v2101_v38 = vld [vmem:[%s2630_s11 + $0x1f8] sm:$0xf0] }
 0x10c   : > { %v2104_v49 = vor.u32 %v2243_v35, %v2101_v38 }
 0x10d   : > { %3508 = vst [vmem:[#allocation19_spill] sm:$0xff] %v2869_v41  ;;  %v2875_v45 = vadd.f32 %v1001_v43, %v833_v42  ;;  %v1972_v43 = vor.u32 %v2212_v23, %v1971_v20 }
 0x10e   : > { %1176 = vst [vmem:[%s2724_s8 + $0x150] sm:$0xff] %v2869_v41 }
 0x10f   : > { %1145 = vst [vmem:[%s2724_s8 + $0x58] sm:$0xff] %v2875_v45 }
 0x110   : > { %v912_v56 = vpop.f32.mrf.mxu2 }
 0x111   : > { %v913_v58 = vadd.f32 %v2709_v48, %v912_v56  ;;  %v1081_v60 = vpop.f32.mrf.mxu3 }
 0x112   : > { %v835_v1 = vpop.f32.mrf.mxu0 }
 0x113   : > { %v2887_v7 = vadd.f32 %v1081_v60, %v913_v58  ;;  %v836_v10 = vadd.f32 %v2709_v48, %v835_v1  ;;  %v1004_v11 = vpop.f32.mrf.mxu1 }
 0x115   : > { %3509 = vst [vmem:[#allocation20_spill] sm:$0xff] %v2887_v7  ;;  %v2892_v12 = vadd.f32 %v1004_v11, %v836_v10  ;;  %874 = vmatmul.bf16.gmra.mxu0 %v1964_v61  ;;  %954 = vmatmul.bf16.gmra.mxu2 %v2092_v63 }
 0x116   : > { %1177 = vst [vmem:[%s2724_s8 + $0x158] sm:$0xff] %v2887_v7  ;;  %1043 = vmatmul.bf16.gmra.mxu1 %v1968_v4  ;;  %1123 = vmatmul.bf16.gmra.mxu3 %v2096_v6 }
 0x117   : > { %1146 = vst [vmem:[%s2724_s8 + $0x60] sm:$0xff] %v2892_v12 }
 0x118   : > { %v915_v13 = vpop.f32.mrf.mxu2 }
 0x119   : > { %v916_v14 = vadd.f32 %v2709_v48, %v915_v13  ;;  %v1084_v15 = vpop.f32.mrf.mxu3 }
 0x11a   : > { %v837_v16 = vpop.f32.mrf.mxu0 }
 0x11b   : > { %v2897_v17 = vadd.f32 %v1084_v15, %v916_v14  ;;  %v838_v18 = vadd.f32 %v2709_v48, %v837_v16  ;;  %v1006_v19 = vpop.f32.mrf.mxu1 }
 0x11d   : > { %3510 = vst [vmem:[#allocation21_spill] sm:$0xff] %v2897_v17  ;;  %v2903_v22 = vadd.f32 %v1006_v19, %v838_v18 }
 0x11e   : > { %1178 = vst [vmem:[%s2724_s8 + $0x160] sm:$0xff] %v2897_v17 }
 0x11f   : > { %1147 = vst [vmem:[%s2724_s8 + $0x68] sm:$0xff] %v2903_v22 }
 0x120   : > { %v917_v39 = vpop.f32.mrf.mxu2 }
 0x121   : > { %v918_v40 = vadd.f32 %v2709_v48, %v917_v39  ;;  %v1086_v42 = vpop.f32.mrf.mxu3 }
 0x122   : > { %v840_v46 = vpop.f32.mrf.mxu0 }
 0x123   : > { %v2915_v50 = vadd.f32 %v1086_v42, %v918_v40  ;;  %v841_v51 = vadd.f32 %v2709_v48, %v840_v46  ;;  %v1009_v52 = vpop.f32.mrf.mxu1 }
 0x125   : > { %3511 = vst [vmem:[#allocation22_spill] sm:$0xff] %v2915_v50  ;;  %v2920_v53 = vadd.f32 %v1009_v52, %v841_v51  ;;  %879 = vmatmul.bf16.gmra.mxu0 %v1972_v43  ;;  %959 = vmatmul.bf16.gmra.mxu2 %v2100_v44 }
 0x126   : > { %1179 = vst [vmem:[%s2724_s8 + $0x168] sm:$0xff] %v2915_v50  ;;  %1048 = vmatmul.bf16.gmra.mxu1 %v1976_v47  ;;  %1128 = vmatmul.bf16.gmra.mxu3 %v2104_v49 }
 0x127   : > { %1148 = vst [vmem:[%s2724_s8 + $0x70] sm:$0xff] %v2920_v53 }
 0x128   : > { %v920_v56 = vpop.f32.mrf.mxu2 }
 0x129   : > { %v921_v58 = vadd.f32 %v2709_v48, %v920_v56  ;;  %v1089_v60 = vpop.f32.mrf.mxu3 }
 0x12a   : > { %v842_v61 = vpop.f32.mrf.mxu0 }
 0x12b   : > { %v2925_v63 = vadd.f32 %v1089_v60, %v921_v58  ;;  %v843_v1 = vadd.f32 %v2709_v48, %v842_v61  ;;  %v1011_v4 = vpop.f32.mrf.mxu1 }
 0x12d   : > { %3512 = vst [vmem:[#allocation23_spill] sm:$0xff] %v2925_v63  ;;  %v2930_v6 = vadd.f32 %v1011_v4, %v843_v1 }
 0x12e   : > { %1180 = vst [vmem:[%s2724_s8 + $0x170] sm:$0xff] %v2925_v63 }
 0x12f   : > { %1149 = vst [vmem:[%s2724_s8 + $0x78] sm:$0xff] %v2930_v6 }
 0x130   : > { %v922_v10 = vpop.f32.mrf.mxu2 }
 0x131   : > { %v923_v11 = vadd.f32 %v2709_v48, %v922_v10  ;;  %v1091_v13 = vpop.f32.mrf.mxu3 }
 0x132   : > { %v845_v14 = vpop.f32.mrf.mxu0 }
 0x133   : > { %v2935_v15 = vadd.f32 %v1091_v13, %v923_v11  ;;  %v846_v16 = vadd.f32 %v2709_v48, %v845_v14  ;;  %v1014_v18 = vpop.f32.mrf.mxu1 }
 0x135   : > { %3513 = vst [vmem:[#allocation24_spill] sm:$0xff] %v2935_v15  ;;  %v2940_v19 = vadd.f32 %v1014_v18, %v846_v16 }
 0x136   : > { %1181 = vst [vmem:[%s2724_s8 + $0x178] sm:$0xff] %v2935_v15 }
 0x137   : > { %1150 = vst [vmem:[%s2724_s8 + $0x80] sm:$0xff] %v2940_v19 }
 0x138   : > { %v925_v20 = vpop.f32.mrf.mxu2 }
 0x139   : > { %v926_v23 = vadd.f32 %v2709_v48, %v925_v20  ;;  %v1094_v26 = vpop.f32.mrf.mxu3 }
 0x13a   : > { %v847_v27 = vpop.f32.mrf.mxu0 }
 0x13b   : > { %v2945_v30 = vadd.f32 %v1094_v26, %v926_v23  ;;  %v848_v32 = vadd.f32 %v2709_v48, %v847_v27  ;;  %v1016_v35 = vpop.f32.mrf.mxu1 }
 0x13d   : > { %3514 = vst [vmem:[#allocation25_spill] sm:$0xff] %v2945_v30  ;;  %v2950_v38 = vadd.f32 %v1016_v35, %v848_v32 }
 0x13e   : > { %1182 = vst [vmem:[%s2724_s8 + $0x180] sm:$0xff] %v2945_v30 }
 0x13f   : > { %1151 = vst [vmem:[%s2724_s8 + $0x88] sm:$0xff] %v2950_v38 }
 0x140   : > { %v927_v39 = vpop.f32.mrf.mxu2 }
 0x141   : > { %v928_v40 = vadd.f32 %v2709_v48, %v927_v39  ;;  %v1096_v42 = vpop.f32.mrf.mxu3 }
 0x142   : > { %v850_v43 = vpop.f32.mrf.mxu0 }
 0x143   : > { %v2955_v44 = vadd.f32 %v1096_v42, %v928_v40  ;;  %v851_v46 = vadd.f32 %v2709_v48, %v850_v43  ;;  %v1019_v47 = vpop.f32.mrf.mxu1 }
 0x145   : > { %3515 = vst [vmem:[#allocation26_spill] sm:$0xff] %v2955_v44  ;;  %v2960_v49 = vadd.f32 %v1019_v47, %v851_v46 }
 0x146   : > { %1183 = vst [vmem:[%s2724_s8 + $0x188] sm:$0xff] %v2955_v44 }
 0x147   : > { %1152 = vst [vmem:[%s2724_s8 + $0x90] sm:$0xff] %v2960_v49 }
 0x148   : > { %v930_v51 = vpop.f32.mrf.mxu2 }
 0x149   : > { %v931_v52 = vadd.f32 %v2709_v48, %v930_v51  ;;  %v1099_v56 = vpop.f32.mrf.mxu3 }
 0x14a   : > { %v852_v58 = vpop.f32.mrf.mxu0 }
 0x14b   : > { %v2965_v60 = vadd.f32 %v1099_v56, %v931_v52  ;;  %v853_v61 = vadd.f32 %v2709_v48, %v852_v58  ;;  %v1021_v1 = vpop.f32.mrf.mxu1 }
 0x14d   : > { %3516 = vst [vmem:[#allocation27_spill] sm:$0xff] %v2965_v60  ;;  %v2970_v4 = vadd.f32 %v1021_v1, %v853_v61 }
 0x14e   : > { %1184 = vst [vmem:[%s2724_s8 + $0x190] sm:$0xff] %v2965_v60 }
 0x14f   : > { %1153 = vst [vmem:[%s2724_s8 + $0x98] sm:$0xff] %v2970_v4 }
 0x150   : > { %v932_v10 = vpop.f32.mrf.mxu2 }
 0x151   : > { %v933_v11 = vadd.f32 %v2709_v48, %v932_v10  ;;  %v1101_v13 = vpop.f32.mrf.mxu3 }
 0x152   : > { %v855_v14 = vpop.f32.mrf.mxu0 }
 0x153   : > { %v2975_v16 = vadd.f32 %v1101_v13, %v933_v11  ;;  %v856_v18 = vadd.f32 %v2709_v48, %v855_v14  ;;  %v1024_v20 = vpop.f32.mrf.mxu1 }
 0x155   : > { %3517 = vst [vmem:[#allocation28_spill] sm:$0xff] %v2975_v16  ;;  %v2980_v23 = vadd.f32 %v1024_v20, %v856_v18 }
 0x156   : > { %1185 = vst [vmem:[%s2724_s8 + $0x198] sm:$0xff] %v2975_v16 }
 0x157   : > { %1154 = vst [vmem:[%s2724_s8 + $0xa0] sm:$0xff] %v2980_v23 }
 0x158   : > { %v935_v26 = vpop.f32.mrf.mxu2 }
 0x159   : > { %v936_v27 = vadd.f32 %v2709_v48, %v935_v26  ;;  %v1104_v32 = vpop.f32.mrf.mxu3 }
 0x15a   : > { %v857_v35 = vpop.f32.mrf.mxu0 }
 0x15b   : > { %v2985_v39 = vadd.f32 %v1104_v32, %v936_v27  ;;  %v858_v40 = vadd.f32 %v2709_v48, %v857_v35  ;;  %v1026_v42 = vpop.f32.mrf.mxu1 }
 0x15d   : > { %3518 = vst [vmem:[#allocation29_spill] sm:$0xff] %v2985_v39  ;;  %v2990_v43 = vadd.f32 %v1026_v42, %v858_v40 }
 0x15e   : > { %1186 = vst [vmem:[%s2724_s8 + $0x1a0] sm:$0xff] %v2985_v39 }
 0x15f   : > { %1155 = vst [vmem:[%s2724_s8 + $0xa8] sm:$0xff] %v2990_v43 }
 0x160   : > { %v937_v46 = vpop.f32.mrf.mxu2 }
 0x161   : > { %v938_v47 = vadd.f32 %v2709_v48, %v937_v46  ;;  %v1106_v51 = vpop.f32.mrf.mxu3 }
 0x162   : > { %v860_v52 = vpop.f32.mrf.mxu0 }
 0x163   : > { %v2995_v56 = vadd.f32 %v1106_v51, %v938_v47  ;;  %v861_v58 = vadd.f32 %v2709_v48, %v860_v52  ;;  %v1029_v61 = vpop.f32.mrf.mxu1 }
 0x165   : > { %3519 = vst [vmem:[#allocation30_spill] sm:$0xff] %v2995_v56  ;;  %v3000_v1 = vadd.f32 %v1029_v61, %v861_v58 }
 0x166   : > { %1187 = vst [vmem:[%s2724_s8 + $0x1a8] sm:$0xff] %v2995_v56 }
 0x167   : > { %1156 = vst [vmem:[%s2724_s8 + $0xb0] sm:$0xff] %v3000_v1 }
 0x168   : > { %v940_v10 = vpop.f32.mrf.mxu2 }
 0x169   : > { %v941_v11 = vadd.f32 %v2709_v48, %v940_v10  ;;  %v1109_v13 = vpop.f32.mrf.mxu3 }
 0x16a   : > { %v862_v14 = vpop.f32.mrf.mxu0 }
 0x16b   : > { %v3005_v18 = vadd.f32 %v1109_v13, %v941_v11  ;;  %v863_v20 = vadd.f32 %v2709_v48, %v862_v14  ;;  %v1031_v26 = vpop.f32.mrf.mxu1 }
 0x16d   : > { %3520 = vst [vmem:[#allocation31_spill] sm:$0xff] %v3005_v18  ;;  %v3010_v27 = vadd.f32 %v1031_v26, %v863_v20 }
 0x16e   : > { %1188 = vst [vmem:[%s2724_s8 + $0x1b0] sm:$0xff] %v3005_v18 }
 0x16f   : > { %1157 = vst [vmem:[%s2724_s8 + $0xb8] sm:$0xff] %v3010_v27 }
 0x170   : > { %v942_v32 = vpop.f32.mrf.mxu2 }
 0x171   : > { %v943_v35 = vadd.f32 %v2709_v48, %v942_v32  ;;  %v1111_v40 = vpop.f32.mrf.mxu3 }
 0x172   : > { %v865_v42 = vpop.f32.mrf.mxu0 }
 0x173   : > { %v3015_v46 = vadd.f32 %v1111_v40, %v943_v35  ;;  %v866_v47 = vadd.f32 %v2709_v48, %v865_v42  ;;  %v1034_v51 = vpop.f32.mrf.mxu1 }
 0x175   : > { %3521 = vst [vmem:[#allocation32_spill] sm:$0xff] %v3015_v46  ;;  %v3020_v52 = vadd.f32 %v1034_v51, %v866_v47 }
 0x176   : > { %1189 = vst [vmem:[%s2724_s8 + $0x1b8] sm:$0xff] %v3015_v46 }
 0x177   : > { %3522 = vst [vmem:[#allocation33_spill] sm:$0xff] %v3020_v52 }
 0x178   : > { %1158 = vst [vmem:[%s2724_s8 + $0xc0] sm:$0xff] %v3020_v52  ;;  %v945_v58 = vpop.f32.mrf.mxu2 }
 0x179   : > { %v946_v61 = vadd.f32 %v2709_v48, %v945_v58  ;;  %v1114_v10 = vpop.f32.mrf.mxu3 }
 0x17a   : > { %v867_v11 = vpop.f32.mrf.mxu0 }
 0x17b   : > { %v3025_v13 = vadd.f32 %v1114_v10, %v946_v61  ;;  %v868_v14 = vadd.f32 %v2709_v48, %v867_v11  ;;  %v1036_v20 = vpop.f32.mrf.mxu1 }
 0x17d   : > { %3523 = vst [vmem:[#allocation34_spill] sm:$0xff] %v3025_v13  ;;  %v3030_v26 = vadd.f32 %v1036_v20, %v868_v14 }
 0x17e   : > { %1190 = vst [vmem:[%s2724_s8 + $0x1c0] sm:$0xff] %v3025_v13 }
 0x17f   : > { %3524 = vst [vmem:[#allocation35_spill] sm:$0xff] %v3030_v26 }
 0x180   : > { %1159 = vst [vmem:[%s2724_s8 + $0xc8] sm:$0xff] %v3030_v26  ;;  %v947_v32 = vpop.f32.mrf.mxu2 }
 0x181   : > { %v948_v35 = vadd.f32 %v2709_v48, %v947_v32  ;;  %v1116_v40 = vpop.f32.mrf.mxu3 }
 0x182   : > { %v870_v42 = vpop.f32.mrf.mxu0 }
 0x183   : > { %v3035_v47 = vadd.f32 %v1116_v40, %v948_v35  ;;  %v871_v51 = vadd.f32 %v2709_v48, %v870_v42  ;;  %v1039_v58 = vpop.f32.mrf.mxu1 }
 0x185   : > { %3525 = vst [vmem:[#allocation36_spill] sm:$0xff] %v3035_v47  ;;  %v3040_v61 = vadd.f32 %v1039_v58, %v871_v51 }
 0x186   : > { %1191 = vst [vmem:[%s2724_s8 + $0x1c8] sm:$0xff] %v3035_v47 }
 0x187   : > { %3526 = vst [vmem:[#allocation37_spill] sm:$0xff] %v3040_v61 }
 0x188   : > { %1160 = vst [vmem:[%s2724_s8 + $0xd0] sm:$0xff] %v3040_v61  ;;  %v950_v10 = vpop.f32.mrf.mxu2 }
 0x189   : > { %v951_v11 = vadd.f32 %v2709_v48, %v950_v10  ;;  %v1119_v14 = vpop.f32.mrf.mxu3 }
 0x18a   : > { %v872_v20 = vpop.f32.mrf.mxu0 }
 0x18b   : > { %v3045_v32 = vadd.f32 %v1119_v14, %v951_v11  ;;  %v873_v35 = vadd.f32 %v2709_v48, %v872_v20  ;;  %v1041_v40 = vpop.f32.mrf.mxu1 }
 0x18d   : > { %3527 = vst [vmem:[#allocation38_spill] sm:$0xff] %v3045_v32  ;;  %v3050_v42 = vadd.f32 %v1041_v40, %v873_v35 }
 0x18e   : > { %1192 = vst [vmem:[%s2724_s8 + $0x1d0] sm:$0xff] %v3045_v32 }
 0x18f   : > { %3528 = vst [vmem:[#allocation39_spill] sm:$0xff] %v3050_v42 }
 0x190   : > { %1161 = vst [vmem:[%s2724_s8 + $0xd8] sm:$0xff] %v3050_v42  ;;  %v952_v51 = vpop.f32.mrf.mxu2 }
 0x191   : > { %v953_v58 = vadd.f32 %v2709_v48, %v952_v51  ;;  %v1121_v10 = vpop.f32.mrf.mxu3 }
 0x192   : > { %v875_v47 = vpop.f32.mrf.mxu0 }
 0x193   : > { %v3055_v13 = vadd.f32 %v1121_v10, %v953_v58  ;;  %v876_v11 = vadd.f32 %v2709_v48, %v875_v47  ;;  %v1044_v14 = vpop.f32.mrf.mxu1 }
 0x195   : > { %3529 = vst [vmem:[#allocation40_spill] sm:$0xff] %v3055_v13  ;;  %v3060_v20 = vadd.f32 %v1044_v14, %v876_v11 }
 0x196   : > { %1193 = vst [vmem:[%s2724_s8 + $0x1d8] sm:$0xff] %v3055_v13 }
 0x197   : > { %3530 = vst [vmem:[#allocation41_spill] sm:$0xff] %v3060_v20 }
 0x198   : > { %1162 = vst [vmem:[%s2724_s8 + $0xe0] sm:$0xff] %v3060_v20  ;;  %v955_v35 = vpop.f32.mrf.mxu2 }
 0x199   : > { %v956_v40 = vadd.f32 %v2709_v48, %v955_v35  ;;  %v1124_v51 = vpop.f32.mrf.mxu3 }
 0x19a   : > { %v877_v32 = vpop.f32.mrf.mxu0 }
 0x19b   : > { %v3065_v46 = vadd.f32 %v1124_v51, %v956_v40  ;;  %v878_v58 = vadd.f32 %v2709_v48, %v877_v32  ;;  %v1046_v10 = vpop.f32.mrf.mxu1 }
 0x19d   : > { %3531 = vst [vmem:[#allocation42_spill] sm:$0xff] %v3065_v46  ;;  %v3070_v47 = vadd.f32 %v1046_v10, %v878_v58 }
 0x19e   : > { %1194 = vst [vmem:[%s2724_s8 + $0x1e0] sm:$0xff] %v3065_v46 }
 0x19f   : > { %3532 = vst [vmem:[#allocation43_spill] sm:$0xff] %v3070_v47 }
 0x1a0   : > { %1163 = vst [vmem:[%s2724_s8 + $0xe8] sm:$0xff] %v3070_v47  ;;  %v957_v11 = vpop.f32.mrf.mxu2 }
 0x1a1   : > { %v958_v14 = vadd.f32 %v2709_v48, %v957_v11  ;;  %v1126_v35 = vpop.f32.mrf.mxu3 }
 0x1a2   : > { %v880_v13 = vpop.f32.mrf.mxu0 }
 0x1a3   : > { %v3075_v18 = vadd.f32 %v1126_v35, %v958_v14  ;;  %v881_v40 = vadd.f32 %v2709_v48, %v880_v13  ;;  %v1049_v51 = vpop.f32.mrf.mxu1 }
 0x1a5   : > { %3533 = vst [vmem:[#allocation44_spill] sm:$0xff] %v3075_v18  ;;  %v3080_v32 = vadd.f32 %v1049_v51, %v881_v40 }
 0x1a6   : > { %1195 = vst [vmem:[%s2724_s8 + $0x1e8] sm:$0xff] %v3075_v18 }
 0x1a7   : > { %3534 = vst [vmem:[#allocation45_spill] sm:$0xff] %v3080_v32 }
 0x1a8   : > { %1164 = vst [vmem:[%s2724_s8 + $0xf0] sm:$0xff] %v3080_v32  ;;  %v960_v58 = vpop.f32.mrf.mxu2 }
 0x1a9   : > { %v961_v10 = vadd.f32 %v2709_v48, %v960_v58  ;;  %v1129_v11 = vpop.f32.mrf.mxu3 }
 0x1aa   : > { %v882_v46 = vpop.f32.mrf.mxu0 }
 0x1ab   : > { %v3085_v56 = vadd.f32 %v1129_v11, %v961_v10  ;;  %v883_v14 = vadd.f32 %v2709_v48, %v882_v46  ;;  %v1051_v35 = vpop.f32.mrf.mxu1 }
 0x1ad   : > { %3535 = vst [vmem:[#allocation46_spill] sm:$0xff] %v3085_v56  ;;  %v3090_v13 = vadd.f32 %v1051_v35, %v883_v14 }
 0x1ae   : > { %1196 = vst [vmem:[%s2724_s8 + $0x1f0] sm:$0xff] %v3085_v56 }
 0x1af   : > { %3536 = vst [vmem:[#allocation47_spill] sm:$0xff] %v3090_v13 }
 0x1b0   : > { %1165 = vst [vmem:[%s2724_s8 + $0xf8] sm:$0xff] %v3090_v13  ;;  %v962_v40 = vpop.f32.mrf.mxu2 }
 0x1b1   : > { %v963_v51 = vadd.f32 %v2709_v48, %v962_v40  ;;  %v1131_v18 = vpop.f32.mrf.mxu3 }
 0x1b2   : > { %1201 = sbr.rel (%p2169_p12) target bundleno = 442 (0x1ba), region = 36 }
 0x1b3   : > { %v3095_v39 = vadd.f32 %v1131_v18, %v963_v51 }
 0x1b5   : > { %3537 = vst [vmem:[#allocation48_spill] sm:$0xff] %v3095_v39 }
 0x1b6   : > { %1197 = vst [vmem:[%s2724_s8 + $0x1f8] sm:$0xff] %v3095_v39 }
 0x1b7   : > { %v2491_v58 = vmov 0.0  }
 0x1b8   : > { %1202 = vst [vmem:[#allocation4] sm:$0x1] %v2491_v58 }
 0x1b9   : > { %1203 = vst [vmem:[#allocation6] sm:$0x1] %v2491_v58 }
 0x1ba PF: > { %v1205_v46 = vlaneseq  ;;  %s2170_s9 = sshll.u32 %s2481_s21, 9  ;;  %s1685_s12 = sshll.u32 %s2724_s8, 4  ;;  %s1686_s12 = int_to_ptr.vmem [resolvable:$true] %s1685_s12 }
 0x1bb   : > { %v3108_v14 = vstv %s2170_s9  ;;  %s1684_s27 = scalar_lea.hbm %s3452_s3, %s2170_s9  ;;  %s1672_s21 = scalar_lea.sflag [#allocation3], %s258_s17 }
 0x1bc   : > { %v3101_v10 = vshrl.u32 %v1205_v46, 7  ;;  %s1687_s13 = sshll.u32 %s1684_s27, 4  ;;  %s2371_s25 = scalar_lea.hbm %s3452_s3, 1024  ;;  %s1688_s13 = int_to_ptr.hbm [resolvable:$true] %s1687_s13 }
 0x1bd   : > { %s2365_s14 = sshra.s32 %s1688_s13, 4  ;;  %s2366_s14 = int_to_ptr.hbm [resolvable:$true] %s2365_s14 }
 0x1be   : > { %v1239_v48 = vadd.s32 264, %v3101_v10  ;;  %v1240_v18 = vadd.s32 272, %v3101_v10  ;;  %v1241_v11 = vadd.s32 280, %v3101_v10  ;;  %v1242_v35 = vadd.s32 288, %v3101_v10  ;;  %s2367_s15 = scalar_lea.hbm %s2366_s14, 512  ;;  %p2372_p3 = scmp.lt.s32.totalorder %s2366_s14, %s3452_s3 }
 0x1bf   : > { %v1243_v40 = vadd.s32 296, %v3101_v10  ;;  %v1244_v51 = vadd.s32 304, %v3101_v10  ;;  %v1245_v58 = vadd.s32 312, %v3101_v10  ;;  %v1246_v46 = vadd.s32 320, %v3101_v10  ;;  %p2368_p13 = scmp.ne.s32.totalorder %s2366_s14, %s2367_s15  ;;  %p2373_p5 = scmp.lt.s32.totalorder %s2371_s25, %s2367_s15 }
 0x1c0   : > { %v1247_v39 = vadd.s32 328, %v3101_v10  ;;  %v1248_v56 = vadd.s32 336, %v3101_v10  ;;  %v1249_v16 = vadd.s32 344, %v3101_v10  ;;  %v1250_v60 = vadd.s32 352, %v3101_v10 }
 0x1c1   : > { %v1251_v44 = vadd.s32 360, %v3101_v10  ;;  %v1252_v30 = vadd.s32 368, %v3101_v10  ;;  %v1253_v15 = vadd.s32 376, %v3101_v10  ;;  %v1254_v63 = vadd.s32 384, %v3101_v10  ;;  %p2369_p0 = pnand %p2368_p13, %p2572_p4  ;;  %p2374_p6 = por %p2373_p5, %p2372_p3 }
 0x1c2   : > { %v1255_v50 = vadd.s32 392, %v3101_v10  ;;  %v1256_v17 = vadd.s32 400, %v3101_v10  ;;  %v1257_v7 = vadd.s32 408, %v3101_v10  ;;  %v1258_v41 = vadd.s32 416, %v3101_v10 }
 0x1c3   : > { %v1259_v29 = vadd.s32 424, %v3101_v10  ;;  %v1260_v2 = vadd.s32 432, %v3101_v10  ;;  %v1261_v55 = vadd.s32 440, %v3101_v10  ;;  %v1262_v31 = vadd.s32 448, %v3101_v10  ;;  %p2370_p1 = pneg %p2369_p0 }
 0x1c4   : > { %v1263_v21 = vadd.s32 456, %v3101_v10  ;;  %v1264_v62 = vadd.s32 464, %v3101_v10  ;;  %v1265_v54 = vadd.s32 472, %v3101_v10  ;;  %v1266_v33 = vadd.s32 480, %v3101_v10 }
 0x1c5   : > { %v1267_v25 = vadd.s32 488, %v3101_v10  ;;  %v1268_v5 = vadd.s32 496, %v3101_v10  ;;  %v1269_v13 = vadd.s32 504, %v3101_v10  ;;  %v3139_v32 = vadd.s32 %v3108_v14, %v1239_v48  ;;  %p2375_p7 = pnand %p2374_p6, %p2370_p1 }
 0x1c6   : > { %v3142_v47 = vadd.s32 %v3108_v14, %v1240_v18  ;;  %v3145_v20 = vadd.s32 %v3108_v14, %v1241_v11  ;;  %v3148_v42 = vadd.s32 %v3108_v14, %v1242_v35  ;;  %v3151_v61 = vadd.s32 %v3108_v14, %v1243_v40 }
 0x1c7   : > { %v3154_v26 = vadd.s32 %v3108_v14, %v1244_v51  ;;  %v3157_v52 = vadd.s32 %v3108_v14, %v1245_v58  ;;  %v3160_v48 = vadd.s32 %v3108_v14, %v1246_v46  ;;  %v3163_v18 = vadd.s32 %v3108_v14, %v1247_v39 }
 0x1c8   : > { %v3166_v11 = vadd.s32 %v3108_v14, %v1248_v56  ;;  %v3169_v35 = vadd.s32 %v3108_v14, %v1249_v16  ;;  %v3172_v40 = vadd.s32 %v3108_v14, %v1250_v60  ;;  %v3175_v51 = vadd.s32 %v3108_v14, %v1251_v44 }
 0x1c9   : > { %v3178_v58 = vadd.s32 %v3108_v14, %v1252_v30  ;;  %v3181_v46 = vadd.s32 %v3108_v14, %v1253_v15  ;;  %v3184_v39 = vadd.s32 %v3108_v14, %v1254_v63  ;;  %v3187_v56 = vadd.s32 %v3108_v14, %v1255_v50 }
 0x1ca   : > { %v3190_v16 = vadd.s32 %v3108_v14, %v1256_v17  ;;  %v3193_v60 = vadd.s32 %v3108_v14, %v1257_v7  ;;  %v3196_v44 = vadd.s32 %v3108_v14, %v1258_v41  ;;  %v3199_v30 = vadd.s32 %v3108_v14, %v1259_v29 }
 0x1cb   : > { %v3202_v15 = vadd.s32 %v3108_v14, %v1260_v2  ;;  %v3205_v63 = vadd.s32 %v3108_v14, %v1261_v55  ;;  %v3208_v50 = vadd.s32 %v3108_v14, %v1262_v31  ;;  %v3211_v17 = vadd.s32 %v3108_v14, %v1263_v21 }
 0x1cc   : > { %3538 = vst [vmem:[#allocation49_spill] sm:$0xff] %v3199_v30  ;;  %v3214_v7 = vadd.s32 %v3108_v14, %v1264_v62  ;;  %v3217_v41 = vadd.s32 %v3108_v14, %v1265_v54  ;;  %v3220_v29 = vadd.s32 %v3108_v14, %v1266_v33  ;;  %v3223_v2 = vadd.s32 %v3108_v14, %v1267_v25 }
 0x1cd   : > { %3539 = vst [vmem:[#allocation50_spill] sm:$0xff] %v3202_v15  ;;  %v3226_v55 = vadd.s32 %v3108_v14, %v1268_v5  ;;  %v3229_v31 = vadd.s32 %v3108_v14, %v1269_v13  ;;  %v1207_v21 = vadd.s32 8, %v3101_v10  ;;  %v1208_v62 = vadd.s32 16, %v3101_v10 }
 0x1ce   : > { %3540 = vst [vmem:[#allocation51_spill] sm:$0xff] %v3205_v63  ;;  %v1271_v54 = vadd.s32 %v3108_v14, %v3101_v10  ;;  %v1210_v25 = vadd.s32 32, %v3101_v10  ;;  %v1211_v5 = vadd.s32 40, %v3101_v10  ;;  %v1217_v15 = vadd.s32 88, %v3101_v10 }
 0x1cf   : > { %3541 = vst [vmem:[#allocation52_spill] sm:$0xff] %v3208_v50  ;;  %v1272_v33 = vadd.s32 %v3108_v14, %v1207_v21 }
 0x1d0   : > { %3542 = vst [vmem:[#allocation53_spill] sm:$0xff] %v3211_v17  ;;  %vm1335_vm0 = vcmp.lt.s32.totalorder %v1271_v54, 1024  ;;  %v1276_v17 = vadd.s32 %v3108_v14, %v1211_v5  ;;  %v1216_v5 = vadd.s32 80, %v3101_v10 }
 0x1d1   : > { %3543 = vst [vmem:[#allocation54_spill] sm:$0xff] %v3214_v7  ;;  %v1209_v7 = vadd.s32 24, %v3101_v10  ;;  %vm1336_vm1 = vcmp.lt.s32.totalorder %v1272_v33, 1024 }
 0x1d2   : > { %3544 = vst [vmem:[#allocation55_spill] sm:$0xff] %v3217_v41  ;;  %v1399_v41 = vsel %vm1335_vm0, %v2722_v0, 0.0  ;;  %v1400_v21 = vsel %vm1336_vm1, %v2735_v9, 0.0  ;;  %vm1340_vm5 = vcmp.lt.s32.totalorder %v1276_v17, 1024 }
 0x1d3   : > { %3545 = vst [vmem:[#allocation56_spill] sm:$0xff] %v3220_v29  ;;  %v1274_v13 = vadd.s32 %v3108_v14, %v1209_v7  ;;  %v1213_v29 = vadd.s32 56, %v3101_v10  ;;  %v1214_v7 = vadd.s32 64, %v3101_v10  ;;  %v1464_v33 = vadd.f32 %v1400_v21, %v1399_v41 }
 0x1d4   : > { %3546 = vst [vmem:[#allocation57_spill] sm:$0xff] %v3223_v2  ;;  %v1273_v2 = vadd.s32 %v3108_v14, %v1208_v62  ;;  %v1536_v9 = vmul.f32 %v1399_v41, %v1399_v41  ;;  %v1537_v63 = vmul.f32 %v1400_v21, %v1400_v21  ;;  %v1218_v21 = vadd.s32 96, %v3101_v10 }
 0x1d5   : > { %3547 = vst [vmem:[#allocation58_spill] sm:$0xff] %v3226_v55  ;;  %v1275_v55 = vadd.s32 %v3108_v14, %v1210_v25  ;;  %vm1338_vm3 = vcmp.lt.s32.totalorder %v1274_v13, 1024  ;;  %v1215_v25 = vadd.s32 72, %v3101_v10  ;;  %v1279_v13 = vadd.s32 %v3108_v14, %v1214_v7 }
 0x1d6   : > { %3548 = vst [vmem:[#allocation59_spill] sm:$0xff] %v3229_v31  ;;  %v1212_v31 = vadd.s32 48, %v3101_v10  ;;  %vm1337_vm2 = vcmp.lt.s32.totalorder %v1273_v2, 1024  ;;  %v1278_v2 = vadd.s32 %v3108_v14, %v1213_v29  ;;  %v1402_v50 = vsel %vm1338_vm3, %v2763_v37, 0.0 }
 0x1d7   : > { %v1401_v62 = vsel %vm1337_vm2, %v2752_v28, 0.0  ;;  %vm1339_vm4 = vcmp.lt.s32.totalorder %v1275_v55, 1024  ;;  %v1280_v30 = vadd.s32 %v3108_v14, %v1215_v25  ;;  %v1404_v29 = vsel %vm1340_vm5, %v2791_v3, 0.0 }
 0x1d8   : > { %v1277_v54 = vadd.s32 %v3108_v14, %v1212_v31  ;;  %v1465_v0 = vadd.f32 %v1464_v33, %v1401_v62  ;;  %v1403_v28 = vsel %vm1339_vm4, %v2780_v57, 0.0  ;;  %v1538_v55 = vmul.f32 %v1401_v62, %v1401_v62 }
 0x1d9   : > { %vm1342_vm7 = vcmp.lt.s32.totalorder %v1278_v2, 1024  ;;  %v1539_v17 = vmul.f32 %v1402_v50, %v1402_v50  ;;  %v1600_v41 = vadd.f32 %v1537_v63, %v1536_v9  ;;  %v1281_v33 = vadd.s32 %v3108_v14, %v1216_v5 }
 0x1da   : > { %vm1341_vm6 = vcmp.lt.s32.totalorder %v1277_v54, 1024  ;;  %v1466_v31 = vadd.f32 %v1465_v0, %v1402_v50  ;;  %vm1343_vm8 = vcmp.lt.s32.totalorder %v1279_v13, 1024  ;;  %v1540_v54 = vmul.f32 %v1403_v28, %v1403_v28 }
 0x1db   : > { %v1405_v57 = vsel %vm1341_vm6, %v2808_v24, 0.0  ;;  %v1601_v62 = vadd.f32 %v1600_v41, %v1538_v55  ;;  %v1219_v0 = vadd.s32 104, %v3101_v10  ;;  %v1282_v25 = vadd.s32 %v3108_v14, %v1217_v15 }
 0x1dc   : > { %v1467_v37 = vadd.f32 %v1466_v31, %v1403_v28  ;;  %v1406_v3 = vsel %vm1342_vm7, %v2819_v36, 0.0  ;;  %vm1344_vm9 = vcmp.lt.s32.totalorder %v1280_v30, 1024  ;;  %v1541_v50 = vmul.f32 %v1404_v29, %v1404_v29 }
 0x1dd   : > { %v1602_v63 = vadd.f32 %v1601_v62, %v1539_v17  ;;  %v1220_v9 = vadd.s32 112, %v3101_v10  ;;  %v1283_v5 = vadd.s32 %v3108_v14, %v1218_v21  ;;  %v1407_v24 = vsel %vm1343_vm8, %v2836_v59, 0.0 }
 0x1de   : > { %v1468_v7 = vadd.f32 %v1467_v37, %v1404_v29  ;;  %vm1345_vm10 = vcmp.lt.s32.totalorder %v1281_v33, 1024  ;;  %v1542_v28 = vmul.f32 %v1405_v57, %v1405_v57  ;;  %v1221_v55 = vadd.s32 120, %v3101_v10 }
 0x1df   : > { %v1603_v31 = vadd.f32 %v1602_v63, %v1540_v54  ;;  %v1284_v15 = vadd.s32 %v3108_v14, %v1219_v0  ;;  %v1408_v36 = vsel %vm1344_vm9, %v2847_v8, 0.0  ;;  %vm1346_vm11 = vcmp.lt.s32.totalorder %v1282_v25, 1024 }
 0x1e0   : > { %v1469_v2 = vadd.f32 %v1468_v7, %v1405_v57  ;;  %v1543_v29 = vmul.f32 %v1406_v3, %v1406_v3  ;;  %v1222_v17 = vadd.s32 128, %v3101_v10  ;;  %v1285_v41 = vadd.s32 %v3108_v14, %v1220_v9 }
 0x1e1   : > { %v1604_v37 = vadd.f32 %v1603_v31, %v1541_v50  ;;  %v1409_v59 = vsel %vm1345_vm10, %v2864_v34, 0.0  ;;  %vm1347_vm12 = vcmp.lt.s32.totalorder %v1283_v5, 1024  ;;  %v1544_v33 = vmul.f32 %v1407_v24, %v1407_v24 }
 0x1e2   : > { %v1470_v13 = vadd.f32 %v1469_v2, %v1406_v3  ;;  %v1223_v7 = vadd.s32 136, %v3101_v10  ;;  %v1286_v8 = vadd.s32 %v3108_v14, %v1221_v55  ;;  %v1410_v54 = vsel %vm1346_vm11, %v2875_v45, 0.0 }
 0x1e3   : > { %v1605_v57 = vadd.f32 %v1604_v37, %v1542_v28  ;;  %vm1348_vm13 = vcmp.lt.s32.totalorder %v1284_v15, 1024  ;;  %v1545_v0 = vmul.f32 %v1408_v36, %v1408_v36  ;;  %v1224_v34 = vadd.s32 144, %v3101_v10 }
 0x1e4   : > { %v1471_v30 = vadd.f32 %v1470_v13, %v1407_v24  ;;  %v1287_v3 = vadd.s32 %v3108_v14, %v1222_v17  ;;  %v1411_v2 = vsel %vm1347_vm12, %v2892_v12, 0.0  ;;  %vm1349_vm14 = vcmp.lt.s32.totalorder %v1285_v41, 1024 }
 0x1e5   : > { %v1606_v25 = vadd.f32 %v1605_v57, %v1543_v29  ;;  %v1546_v50 = vmul.f32 %v1409_v59, %v1409_v59  ;;  %v1225_v9 = vadd.s32 152, %v3101_v10  ;;  %v1288_v5 = vadd.s32 %v3108_v14, %v1223_v7 }
 0x1e6   : > { %v1472_v21 = vadd.f32 %v1471_v30, %v1408_v36  ;;  %v1412_v24 = vsel %vm1348_vm13, %v2903_v22, 0.0  ;;  %vm1350_vm15 = vcmp.lt.s32.totalorder %v1286_v8, 1024  ;;  %v1547_v12 = vmul.f32 %v1410_v54, %v1410_v54 }
 0x1e7   : > { %v1607_v63 = vadd.f32 %v1606_v25, %v1544_v33 }
 0x1e8   : > { %v1473_v62 = vadd.f32 %v1472_v21, %v1409_v59 }
 0x1e9   : > { %v1608_v28 = vadd.f32 %v1607_v63, %v1545_v0 }
 0x1ea   : > { %v1474_v45 = vadd.f32 %v1473_v62, %v1410_v54 }
 0x1ec   : > { %v1475_v13 = vadd.f32 %v1474_v45, %v1411_v2 }
 0x1ed   : > { %2378 = shalt.err (!%p2375_p7)
}
 0x1ee   : > { %s2492_s17 = smov 128   ;;  %s2493_s9 = smov 8   ;;  %v1226_v22 = vadd.s32 160, %v3101_v10  ;;  %v1289_v31 = vadd.s32 %v3108_v14, %v1224_v34  ;;  %v1413_v55 = vsel %vm1349_vm14, %v2920_v53, 0.0  ;;  %vm1351_vm0 = vcmp.lt.s32.totalorder %v1287_v3, 1024 }
 0x1ef   : > { %2278 = dma.vmem_to_hbm [thread:$0]  (%p2572_p4), %s1686_s12, 8192, %s1688_s13, %s1672_s21, %s2492_s17, %s2492_s17, %s2493_s9   ;;  %v1476_v15 = vadd.f32 %v1475_v13, %v1412_v24  ;;  %v1548_v36 = vmul.f32 %v1411_v2, %v1411_v2  ;;  %v1609_v30 = vadd.f32 %v1608_v28, %v1546_v50  ;;  %v1227_v29 = vadd.s32 168, %v3101_v10 }
 0x1f0   : > { %v1290_v37 = vadd.s32 %v3108_v14, %v1225_v9  ;;  %v1414_v17 = vsel %vm1350_vm15, %v2930_v6, 0.0  ;;  %vm1352_vm1 = vcmp.lt.s32.totalorder %v1288_v5, 1024  ;;  %v1549_v21 = vmul.f32 %v1412_v24, %v1412_v24  ;;  %s2494_s29 = smov [#allocation4]   ;;  %s1703_s12 = sshll.u32 %s3453_s4, 4  ;;  %s1704_s12 = int_to_ptr.hbm [resolvable:$true] %s1703_s12 }
 0x1f1   : > { %v1477_v59 = vadd.f32 %v1476_v15, %v1413_v55  ;;  %v1610_v33 = vadd.f32 %v1609_v30, %v1547_v12  ;;  %v1228_v57 = vadd.s32 176, %v3101_v10  ;;  %v1291_v41 = vadd.s32 %v3108_v14, %v1226_v22  ;;  %s1701_s10 = sshll.u32 %s2494_s29, 4  ;;  %s2495_s13 = smov [#allocation6]   ;;  %s1702_s10 = int_to_ptr.vmem [resolvable:$true] %s1701_s10 }
 0x1f2   : > { %v1415_v53 = vsel %vm1351_vm0, %v2940_v19, 0.0  ;;  %vm1353_vm2 = vcmp.lt.s32.totalorder %v1289_v31, 1024  ;;  %v1550_v54 = vmul.f32 %v1413_v55, %v1413_v55  ;;  %v1229_v0 = vadd.s32 184, %v3101_v10  ;;  %s1714_s21 = sshll.u32 %s2495_s13, 4  ;;  %s1716_s16 = sshll.u32 %s3454_s5, 4  ;;  %s1715_s21 = int_to_ptr.vmem [resolvable:$true] %s1714_s21  ;;  %s1717_s16 = int_to_ptr.hbm [resolvable:$true] %s1716_s16 }
 0x1f3   : > { %v1478_v7 = vadd.f32 %v1477_v59, %v1414_v17  ;;  %v1611_v62 = vadd.f32 %v1610_v33, %v1548_v36  ;;  %v1292_v25 = vadd.s32 %v3108_v14, %v1227_v29  ;;  %v1416_v6 = vsel %vm1352_vm1, %v2950_v38, 0.0 }
 0x1f4   : > { %vm1354_vm3 = vcmp.lt.s32.totalorder %v1290_v37, 1024  ;;  %v1551_v34 = vmul.f32 %v1414_v17, %v1414_v17  ;;  %v1230_v2 = vadd.s32 192, %v3101_v10  ;;  %v1293_v45 = vadd.s32 %v3108_v14, %v1228_v57 }
 0x1f5   : > { %v1479_v8 = vadd.f32 %v1478_v7, %v1415_v53  ;;  %v1612_v3 = vadd.f32 %v1611_v62, %v1549_v21  ;;  %v1417_v19 = vsel %vm1353_vm2, %v2960_v49, 0.0  ;;  %vm1355_vm4 = vcmp.lt.s32.totalorder %v1291_v41, 1024 }
 0x1f6   : > { %v1552_v63 = vmul.f32 %v1415_v53, %v1415_v53  ;;  %v1231_v5 = vadd.s32 200, %v3101_v10  ;;  %v1294_v24 = vadd.s32 %v3108_v14, %v1229_v0  ;;  %v1418_v38 = vsel %vm1354_vm3, %v2970_v4, 0.0 }
 0x1f7   : > { %v1480_v50 = vadd.f32 %v1479_v8, %v1416_v6  ;;  %v1613_v9 = vadd.f32 %v1612_v3, %v1550_v54  ;;  %vm1356_vm5 = vcmp.lt.s32.totalorder %v1292_v25, 1024  ;;  %v1553_v12 = vmul.f32 %v1416_v6, %v1416_v6 }
 0x1f8   : > { %v1232_v22 = vadd.s32 208, %v3101_v10  ;;  %v1295_v31 = vadd.s32 %v3108_v14, %v1230_v2  ;;  %v1419_v49 = vsel %vm1355_vm4, %v2980_v23, 0.0  ;;  %vm1357_vm6 = vcmp.lt.s32.totalorder %v1293_v45, 1024 }
 0x1f9   : > { %v1481_v13 = vadd.f32 %v1480_v50, %v1417_v19  ;;  %v1614_v28 = vadd.f32 %v1613_v9, %v1551_v34  ;;  %v1554_v15 = vmul.f32 %v1417_v19, %v1417_v19  ;;  %v1233_v30 = vadd.s32 216, %v3101_v10  ;;  %v3549_v34 = vld [vmem:[#allocation33_spill] sm:$0xff] }
 0x1fa   : > { %v1296_v29 = vadd.s32 %v3108_v14, %v1231_v5  ;;  %v1420_v4 = vsel %vm1356_vm5, %v2990_v43, 0.0  ;;  %vm1358_vm7 = vcmp.lt.s32.totalorder %v1294_v24, 1024  ;;  %v1555_v17 = vmul.f32 %v1418_v38, %v1418_v38 }
 0x1fb   : > { %v1482_v55 = vadd.f32 %v1481_v13, %v1418_v38  ;;  %v1615_v36 = vadd.f32 %v1614_v28, %v1552_v63  ;;  %v1234_v21 = vadd.s32 224, %v3101_v10  ;;  %v1297_v33 = vadd.s32 %v3108_v14, %v1232_v22  ;;  %v3550_v63 = vld [vmem:[#allocation35_spill] sm:$0xff] }
 0x1fc   : > { %v1421_v23 = vsel %vm1357_vm6, %v3000_v1, 0.0  ;;  %vm1359_vm8 = vcmp.lt.s32.totalorder %v1295_v31, 1024  ;;  %v1556_v41 = vmul.f32 %v1419_v49, %v1419_v49  ;;  %v1235_v7 = vadd.s32 232, %v3101_v10 }
 0x1fd   : > { %v1483_v37 = vadd.f32 %v1482_v55, %v1419_v49  ;;  %v1616_v59 = vadd.f32 %v1615_v36, %v1553_v12  ;;  %v1298_v54 = vadd.s32 %v3108_v14, %v1233_v30  ;;  %v1422_v43 = vsel %vm1358_vm7, %v3010_v27, 0.0  ;;  %v3551_v12 = vld [vmem:[#allocation37_spill] sm:$0xff] }
 0x1fe   : > { %vm1360_vm9 = vcmp.lt.s32.totalorder %v1296_v29, 1024  ;;  %v1557_v0 = vmul.f32 %v1420_v4, %v1420_v4  ;;  %v1236_v6 = vadd.s32 240, %v3101_v10  ;;  %v1299_v8 = vadd.s32 %v3108_v14, %v1234_v21 }
 0x1ff   : > { %v1484_v57 = vadd.f32 %v1483_v37, %v1420_v4  ;;  %v1617_v53 = vadd.f32 %v1616_v59, %v1554_v15  ;;  %v1423_v1 = vsel %vm1359_vm8, %v3549_v34, 0.0  ;;  %vm1361_vm10 = vcmp.lt.s32.totalorder %v1297_v33, 1024  ;;  %v3552_v15 = vld [vmem:[#allocation39_spill] sm:$0xff] }
 0x200   : > { %v1558_v2 = vmul.f32 %v1421_v23, %v1421_v23  ;;  %v1237_v19 = vadd.s32 248, %v3101_v10  ;;  %v1300_v50 = vadd.s32 %v3108_v14, %v1235_v7  ;;  %v1424_v27 = vsel %vm1360_vm9, %v3550_v63, 0.0  ;;  %v3558_v63 = vld [vmem:[#allocation10_spill] sm:$0xff] }
 0x201   : > { %v1485_v62 = vadd.f32 %v1484_v57, %v1421_v23  ;;  %v1618_v25 = vadd.f32 %v1617_v53, %v1555_v17  ;;  %vm1362_vm11 = vcmp.lt.s32.totalorder %v1298_v54, 1024  ;;  %v1559_v5 = vmul.f32 %v1422_v43, %v1422_v43  ;;  %v3553_v17 = vld [vmem:[#allocation41_spill] sm:$0xff]  ;;  %v3554_v23 = vld [vmem:[#allocation43_spill] sm:$0xff] }
 0x202   : > { %v1238_v38 = vadd.s32 256, %v3101_v10  ;;  %v1301_v13 = vadd.s32 %v3108_v14, %v1236_v6  ;;  %v1425_v28 = vsel %vm1361_vm10, %v3551_v12, 0.0  ;;  %vm1363_vm12 = vcmp.lt.s32.totalorder %v1299_v8, 1024  ;;  %v3555_v54 = vld [vmem:[#allocation45_spill] sm:$0xff]  ;;  %v3556_v6 = vld [vmem:[#allocation47_spill] sm:$0xff] }
 0x203   : > { %v1486_v3 = vadd.f32 %v1485_v62, %v1422_v43  ;;  %v1619_v45 = vadd.f32 %v1618_v25, %v1556_v41  ;;  %v1560_v31 = vmul.f32 %v1423_v1, %v1423_v1  ;;  %v1302_v55 = vadd.s32 %v3108_v14, %v1237_v19 }
 0x204   : > { %v1426_v36 = vsel %vm1362_vm11, %v3552_v15, 0.0  ;;  %vm1364_vm13 = vcmp.lt.s32.totalorder %v1300_v50, 1024  ;;  %v1561_v29 = vmul.f32 %v1424_v27, %v1424_v27  ;;  %v1303_v37 = vadd.s32 %v3108_v14, %v1238_v38  ;;  %v3559_v38 = vld [vmem:[#allocation11_spill] sm:$0xff]  ;;  %v3561_v15 = vld [vmem:[#allocation13_spill] sm:$0xff] }
 0x205   : > { %v1487_v9 = vadd.f32 %v1486_v3, %v1423_v1  ;;  %v1620_v24 = vadd.f32 %v1619_v45, %v1557_v0  ;;  %v1427_v10 = vsel %vm1363_vm12, %v3553_v17, 0.0  ;;  %vm1365_vm14 = vcmp.lt.s32.totalorder %v1301_v13, 1024  ;;  %v3557_v3 = vld [vmem:[#allocation9_spill] sm:$0xff] }
 0x206   : > { %v1562_v21 = vmul.f32 %v1425_v28, %v1425_v28  ;;  %v1428_v57 = vsel %vm1364_vm13, %v3554_v23, 0.0  ;;  %vm1366_vm15 = vcmp.lt.s32.totalorder %v1302_v55, 1024  ;;  %v1563_v53 = vmul.f32 %v1426_v36, %v1426_v36 }
 0x207   : > { %v1488_v22 = vadd.f32 %v1487_v9, %v1424_v27  ;;  %v1621_v49 = vadd.f32 %v1620_v24, %v1558_v2  ;;  %v1429_v43 = vsel %vm1365_vm14, %v3555_v54, 0.0  ;;  %vm1367_vm0 = vcmp.lt.s32.totalorder %v1303_v37, 1024  ;;  %v3565_v54 = vld [vmem:[#allocation17_spill] sm:$0xff] }
 0x208   : > { %v1564_v0 = vmul.f32 %v1427_v10, %v1427_v10  ;;  %v1430_v14 = vsel %vm1366_vm15, %v3556_v6, 0.0  ;;  %vm1368_vm1 = vcmp.lt.s32.totalorder %v3139_v32, 1024  ;;  %v1565_v34 = vmul.f32 %v1428_v57, %v1428_v57 }
 0x209   : > { %v1489_v30 = vadd.f32 %v1488_v22, %v1425_v28  ;;  %v1622_v4 = vadd.f32 %v1621_v49, %v1559_v5  ;;  %v1431_v2 = vsel %vm1367_vm0, %v3557_v3, 0.0  ;;  %vm1369_vm2 = vcmp.lt.s32.totalorder %v3142_v47, 1024  ;;  %v3560_v22 = vld [vmem:[#allocation12_spill] sm:$0xff] }
 0x20a   : > { %v1566_v19 = vmul.f32 %v1429_v43, %v1429_v43  ;;  %v1432_v27 = vsel %vm1368_vm1, %v3558_v63, 0.0  ;;  %vm1370_vm3 = vcmp.lt.s32.totalorder %v3145_v20, 1024  ;;  %v1567_v5 = vmul.f32 %v1430_v14, %v1430_v14 }
 0x20b   : > { %v1490_v59 = vadd.f32 %v1489_v30, %v1426_v36  ;;  %v1623_v33 = vadd.f32 %v1622_v4, %v1560_v31  ;;  %v1433_v13 = vsel %vm1369_vm2, %v3559_v38, 0.0  ;;  %vm1371_vm4 = vcmp.lt.s32.totalorder %v3148_v42, 1024  ;;  %v3562_v4 = vld [vmem:[#allocation14_spill] sm:$0xff] }
 0x20c   : > { %v1568_v12 = vmul.f32 %v1431_v2, %v1431_v2  ;;  %v1434_v31 = vsel %vm1370_vm3, %v3560_v22, 0.0  ;;  %vm1372_vm5 = vcmp.lt.s32.totalorder %v3151_v61, 1024  ;;  %v1569_v49 = vmul.f32 %v1432_v27, %v1432_v27  ;;  %v3570_v38 = vld [vmem:[#allocation22_spill] sm:$0xff] }
 0x20d   : > { %v1491_v41 = vadd.f32 %v1490_v59, %v1427_v10  ;;  %v1624_v7 = vadd.f32 %v1623_v33, %v1561_v29  ;;  %v1435_v36 = vsel %vm1371_vm4, %v3561_v15, 0.0  ;;  %vm1373_vm6 = vcmp.lt.s32.totalorder %v3154_v26, 1024  ;;  %v3563_v59 = vld [vmem:[#allocation15_spill] sm:$0xff] }
 0x20e   : > { %v1570_v30 = vmul.f32 %v1433_v13, %v1433_v13  ;;  %v1436_v37 = vsel %vm1372_vm5, %v3562_v4, 0.0  ;;  %vm1374_vm7 = vcmp.lt.s32.totalorder %v3157_v52, 1024  ;;  %v1571_v17 = vmul.f32 %v1434_v31, %v1434_v31 }
 0x20f   : > { %v1492_v62 = vadd.f32 %v1491_v41, %v1428_v57  ;;  %v1625_v25 = vadd.f32 %v1624_v7, %v1562_v21  ;;  %v1437_v21 = vsel %vm1373_vm6, %v3563_v59, 0.0  ;;  %vm1375_vm8 = vcmp.lt.s32.totalorder %v3160_v48, 1024  ;;  %v3564_v57 = vld [vmem:[#allocation16_spill] sm:$0xff]  ;;  %v3575_v59 = vld [vmem:[#allocation27_spill] sm:$0xff] }
 0x210   : > { %v1572_v33 = vmul.f32 %v1435_v36, %v1435_v36  ;;  %v1438_v41 = vsel %vm1374_vm7, %v3564_v57, 0.0  ;;  %vm1376_vm9 = vcmp.lt.s32.totalorder %v3163_v18, 1024  ;;  %vm1377_vm10 = vcmp.lt.s32.totalorder %v3166_v11, 1024 }
 0x211   : > { %v1493_v8 = vadd.f32 %v1492_v62, %v1429_v43  ;;  %v1626_v1 = vadd.f32 %v1625_v25, %v1563_v53  ;;  %v1573_v53 = vmul.f32 %v1436_v37, %v1436_v37  ;;  %v1439_v43 = vsel %vm1375_vm8, %v3565_v54, 0.0  ;;  %v3566_v25 = vld [vmem:[#allocation18_spill] sm:$0xff] }
 0x212   : > { %v1574_v62 = vmul.f32 %v1437_v21, %v1437_v21  ;;  %v1440_v6 = vsel %vm1376_vm9, %v3566_v25, 0.0  ;;  %vm1378_vm11 = vcmp.lt.s32.totalorder %v3169_v35, 1024  ;;  %vm1379_vm12 = vcmp.lt.s32.totalorder %v3172_v40, 1024 }
 0x213   : > { %v1494_v45 = vadd.f32 %v1493_v8, %v1430_v14  ;;  %v1627_v50 = vadd.f32 %v1626_v1, %v1564_v0  ;;  %v1575_v14 = vmul.f32 %v1438_v41, %v1438_v41  ;;  %v1576_v3 = vmul.f32 %v1439_v43, %v1439_v43 }
 0x214   : > { %vm1380_vm13 = vcmp.lt.s32.totalorder %v3175_v51, 1024  ;;  %vm1381_vm14 = vcmp.lt.s32.totalorder %v3178_v58, 1024  ;;  %vm1382_vm15 = vcmp.lt.s32.totalorder %v3181_v46, 1024  ;;  %vm1383_vm0 = vcmp.lt.s32.totalorder %v3184_v39, 1024 }
 0x215   : > { %v1495_v9 = vadd.f32 %v1494_v45, %v1431_v2  ;;  %v1628_v24 = vadd.f32 %v1627_v50, %v1565_v34  ;;  %v3567_v34 = vld [vmem:[#allocation19_spill] sm:$0xff]  ;;  %v3568_v45 = vld [vmem:[#allocation20_spill] sm:$0xff]  ;;  %v1577_v50 = vmul.f32 %v1440_v6, %v1440_v6  ;;  %vm1384_vm1 = vcmp.lt.s32.totalorder %v3187_v56, 1024 }
 0x216   : > { %v1441_v1 = vsel %vm1377_vm10, %v3567_v34, 0.0  ;;  %vm1385_vm2 = vcmp.lt.s32.totalorder %v3190_v16, 1024  ;;  %vm1386_vm3 = vcmp.lt.s32.totalorder %v3193_v60, 1024  ;;  %vm1387_vm4 = vcmp.lt.s32.totalorder %v3196_v44, 1024  ;;  %v3577_v16 = vld [vmem:[#allocation49_spill] sm:$0xff]  ;;  %v3579_v60 = vld [vmem:[#allocation50_spill] sm:$0xff] }
 0x217   : > { %v1496_v32 = vadd.f32 %v1495_v9, %v1432_v27  ;;  %v1629_v28 = vadd.f32 %v1628_v24, %v1566_v19  ;;  %v1442_v19 = vsel %vm1378_vm11, %v3568_v45, 0.0  ;;  %v3569_v27 = vld [vmem:[#allocation21_spill] sm:$0xff]  ;;  %vm1388_vm5 = vcmp.lt.s32.totalorder %v3577_v16, 1024  ;;  %v3581_v44 = vld [vmem:[#allocation51_spill] sm:$0xff]  ;;  %v3584_v45 = vld [vmem:[#allocation32_spill] sm:$0xff] }
 0x218   : > { %v1443_v9 = vsel %vm1379_vm12, %v3569_v27, 0.0  ;;  %vm1389_vm6 = vcmp.lt.s32.totalorder %v3579_v60, 1024  ;;  %vm1390_vm7 = vcmp.lt.s32.totalorder %v3581_v44, 1024  ;;  %v3598_v16 = vld [vmem:[#allocation46_spill] sm:$0xff] }
 0x219   : > { %v1497_v47 = vadd.f32 %v1496_v32, %v1433_v13  ;;  %v1630_v55 = vadd.f32 %v1629_v28, %v1567_v5  ;;  %v1578_v5 = vmul.f32 %v1441_v1, %v1441_v1  ;;  %v1444_v13 = vsel %vm1380_vm13, %v3570_v38, 0.0  ;;  %v3571_v28 = vld [vmem:[#allocation23_spill] sm:$0xff] }
 0x21a   : > { %v1579_v32 = vmul.f32 %v1442_v19, %v1442_v19  ;;  %v1445_v22 = vsel %vm1381_vm14, %v3571_v28, 0.0  ;;  %v1581_v15 = vmul.f32 %v1444_v13, %v1444_v13 }
 0x21b   : > { %v1498_v20 = vadd.f32 %v1497_v47, %v1434_v31  ;;  %v1631_v29 = vadd.f32 %v1630_v55, %v1568_v12  ;;  %v1580_v31 = vmul.f32 %v1443_v9, %v1443_v9 }
 0x21d   : > { %v1499_v42 = vadd.f32 %v1498_v20, %v1435_v36  ;;  %v1632_v10 = vadd.f32 %v1631_v29, %v1569_v49  ;;  %v3572_v49 = vld [vmem:[#allocation24_spill] sm:$0xff]  ;;  %v3573_v20 = vld [vmem:[#allocation25_spill] sm:$0xff]  ;;  %v1582_v29 = vmul.f32 %v1445_v22, %v1445_v22 }
 0x21e   : > { %v1446_v55 = vsel %vm1382_vm15, %v3572_v49, 0.0  ;;  %v3591_v49 = vld [vmem:[#allocation56_spill] sm:$0xff] }
 0x21f   : > { %v1500_v61 = vadd.f32 %v1499_v42, %v1436_v37  ;;  %v1633_v23 = vadd.f32 %v1632_v10, %v1570_v30  ;;  %v1447_v30 = vsel %vm1383_vm0, %v3573_v20, 0.0  ;;  %v3574_v37 = vld [vmem:[#allocation26_spill] sm:$0xff]  ;;  %vm1395_vm12 = vcmp.lt.s32.totalorder %v3591_v49, 1024 }
 0x220   : > { %v1448_v42 = vsel %vm1384_vm1, %v3574_v37, 0.0  ;;  %v3594_v37 = vld [vmem:[#allocation42_spill] sm:$0xff] }
 0x221   : > { %v1501_v26 = vadd.f32 %v1500_v61, %v1437_v21  ;;  %v1634_v7 = vadd.f32 %v1633_v23, %v1571_v17  ;;  %v1583_v17 = vmul.f32 %v1446_v55, %v1446_v55  ;;  %v1449_v21 = vsel %vm1385_vm2, %v3575_v59, 0.0  ;;  %v3576_v23 = vld [vmem:[#allocation28_spill] sm:$0xff] }
 0x222   : > { %v1584_v61 = vmul.f32 %v1447_v30, %v1447_v30  ;;  %v1450_v57 = vsel %vm1386_vm3, %v3576_v23, 0.0 }
 0x223   : > { %v1502_v52 = vadd.f32 %v1501_v26, %v1438_v41  ;;  %v1635_v0 = vadd.f32 %v1634_v7, %v1572_v33  ;;  %v1585_v26 = vmul.f32 %v1448_v42, %v1448_v42  ;;  %v3578_v7 = vld [vmem:[#allocation29_spill] sm:$0xff] }
 0x224   : > { %v1451_v54 = vsel %vm1387_vm4, %v3578_v7, 0.0 }
 0x225   : > { %v1503_v48 = vadd.f32 %v1502_v52, %v1439_v43  ;;  %v1636_v8 = vadd.f32 %v1635_v0, %v1573_v53  ;;  %v1586_v52 = vmul.f32 %v1449_v21, %v1449_v21  ;;  %v3580_v0 = vld [vmem:[#allocation30_spill] sm:$0xff] }
 0x226   : > { %v1452_v25 = vsel %vm1388_vm5, %v3580_v0, 0.0 }
 0x227   : > { %v1504_v18 = vadd.f32 %v1503_v48, %v1440_v6  ;;  %v1637_v2 = vadd.f32 %v1636_v8, %v1574_v62  ;;  %v1587_v48 = vmul.f32 %v1450_v57, %v1450_v57  ;;  %v3582_v8 = vld [vmem:[#allocation31_spill] sm:$0xff] }
 0x228   : > { %v1453_v34 = vsel %vm1389_vm6, %v3582_v8, 0.0 }
 0x229   : > { %v1505_v11 = vadd.f32 %v1504_v18, %v1441_v1  ;;  %v1638_v63 = vadd.f32 %v1637_v2, %v1575_v14  ;;  %v3583_v1 = vld [vmem:[#allocation52_spill] sm:$0xff]  ;;  %v1590_v38 = vmul.f32 %v1453_v34, %v1453_v34 }
 0x22a   : > { %vm1391_vm8 = vcmp.lt.s32.totalorder %v3583_v1, 1024 }
 0x22b   : > { %v1506_v35 = vadd.f32 %v1505_v11, %v1442_v19  ;;  %v1639_v24 = vadd.f32 %v1638_v63, %v1576_v3  ;;  %v1588_v3 = vmul.f32 %v1451_v54, %v1451_v54  ;;  %v1454_v19 = vsel %vm1390_vm7, %v3584_v45, 0.0  ;;  %v3585_v11 = vld [vmem:[#allocation53_spill] sm:$0xff] }
 0x22c   : > { %vm1392_vm9 = vcmp.lt.s32.totalorder %v3585_v11, 1024  ;;  %v1589_v63 = vmul.f32 %v1452_v25, %v1452_v25  ;;  %v1463_v11 = vld [vmem:[#allocation4] sm:$0x1] }
 0x22d   : > { %v1507_v40 = vadd.f32 %v1506_v35, %v1443_v9  ;;  %v1640_v12 = vadd.f32 %v1639_v24, %v1577_v50  ;;  %v3586_v9 = vld [vmem:[#allocation34_spill] sm:$0xff] }
 0x22e   : > { %v1455_v35 = vsel %vm1391_vm8, %v3586_v9, 0.0 }
 0x22f   : > { %v1508_v51 = vadd.f32 %v1507_v40, %v1444_v13  ;;  %v1641_v47 = vadd.f32 %v1640_v12, %v1578_v5  ;;  %v3587_v5 = vld [vmem:[#allocation54_spill] sm:$0xff]  ;;  %v3588_v40 = vld [vmem:[#allocation36_spill] sm:$0xff]  ;;  %v3589_v12 = vld [vmem:[#allocation55_spill] sm:$0xff] }
 0x230   : > { %vm1393_vm10 = vcmp.lt.s32.totalorder %v3587_v5, 1024  ;;  %vm1394_vm11 = vcmp.lt.s32.totalorder %v3589_v12, 1024  ;;  %v1535_v5 = vld [vmem:[#allocation6] sm:$0x1] }
 0x231   : > { %v1509_v58 = vadd.f32 %v1508_v51, %v1445_v22  ;;  %v1642_v36 = vadd.f32 %v1641_v47, %v1579_v32  ;;  %v1456_v32 = vsel %vm1392_vm9, %v3588_v40, 0.0  ;;  %v1591_v22 = vmul.f32 %v1454_v19, %v1454_v19 }
 0x233   : > { %v1510_v46 = vadd.f32 %v1509_v58, %v1446_v55  ;;  %v1643_v4 = vadd.f32 %v1642_v36, %v1580_v31  ;;  %v3590_v31 = vld [vmem:[#allocation38_spill] sm:$0xff]  ;;  %v1592_v58 = vmul.f32 %v1455_v35, %v1455_v35  ;;  %v3592_v36 = vld [vmem:[#allocation40_spill] sm:$0xff] }
 0x234   : > { %v1457_v47 = vsel %vm1393_vm10, %v3590_v31, 0.0  ;;  %v1458_v20 = vsel %vm1394_vm11, %v3592_v36, 0.0 }
 0x235   : > { %v1511_v39 = vadd.f32 %v1510_v46, %v1447_v30  ;;  %v1644_v10 = vadd.f32 %v1643_v4, %v1581_v15  ;;  %v3593_v30 = vld [vmem:[#allocation57_spill] sm:$0xff]  ;;  %v1595_v23 = vmul.f32 %v1458_v20, %v1458_v20 }
 0x236   : > { %vm1396_vm13 = vcmp.lt.s32.totalorder %v3593_v30, 1024 }
 0x237   : > { %v1512_v56 = vadd.f32 %v1511_v39, %v1448_v42  ;;  %v1645_v33 = vadd.f32 %v1644_v10, %v1582_v29  ;;  %v1593_v29 = vmul.f32 %v1456_v32, %v1456_v32  ;;  %v1459_v42 = vsel %vm1395_vm12, %v3594_v37, 0.0  ;;  %v3595_v39 = vld [vmem:[#allocation58_spill] sm:$0xff] }
 0x238   : > { %vm1397_vm14 = vcmp.lt.s32.totalorder %v3595_v39, 1024  ;;  %v1594_v10 = vmul.f32 %v1457_v47, %v1457_v47 }
 0x239   : > { %v1513_v41 = vadd.f32 %v1512_v56, %v1449_v21  ;;  %v1646_v53 = vadd.f32 %v1645_v33, %v1583_v17  ;;  %v3596_v21 = vld [vmem:[#allocation44_spill] sm:$0xff] }
 0x23a   : > { %v1460_v56 = vsel %vm1396_vm13, %v3596_v21, 0.0 }
 0x23b   : > { %v1514_v43 = vadd.f32 %v1513_v41, %v1450_v57  ;;  %v1647_v62 = vadd.f32 %v1646_v53, %v1584_v61  ;;  %v3597_v61 = vld [vmem:[#allocation59_spill] sm:$0xff]  ;;  %v1461_v41 = vsel %vm1397_vm14, %v3598_v16, 0.0  ;;  %v1596_v53 = vmul.f32 %v1459_v42, %v1459_v42 }
 0x23c   : > { %vm1398_vm15 = vcmp.lt.s32.totalorder %v3597_v61, 1024 }
 0x23d   : > { %v1515_v6 = vadd.f32 %v1514_v43, %v1451_v54  ;;  %v1648_v14 = vadd.f32 %v1647_v62, %v1585_v26  ;;  %v3599_v54 = vld [vmem:[#allocation48_spill] sm:$0xff] }
 0x23e   : > { %v1462_v60 = vsel %vm1398_vm15, %v3599_v54, 0.0 }
 0x23f   : > { %v1516_v18 = vadd.f32 %v1515_v6, %v1452_v25  ;;  %v1649_v2 = vadd.f32 %v1648_v14, %v1586_v52  ;;  %v1597_v52 = vmul.f32 %v1460_v56, %v1460_v56  ;;  %v1598_v25 = vmul.f32 %v1461_v41, %v1461_v41 }
 0x241   : > { %v1517_v50 = vadd.f32 %v1516_v18, %v1453_v34  ;;  %v1650_v27 = vadd.f32 %v1649_v2, %v1587_v48  ;;  %v1599_v48 = vmul.f32 %v1462_v60, %v1462_v60 }
 0x243   : > { %v1518_v24 = vadd.f32 %v1517_v50, %v1454_v19  ;;  %v1651_v13 = vadd.f32 %v1650_v27, %v1588_v3 }
 0x245   : > { %v1519_v28 = vadd.f32 %v1518_v24, %v1455_v35  ;;  %v1652_v51 = vadd.f32 %v1651_v13, %v1589_v63 }
 0x247   : > { %v1520_v55 = vadd.f32 %v1519_v28, %v1456_v32  ;;  %v1653_v15 = vadd.f32 %v1652_v51, %v1590_v38 }
 0x249   : > { %v1521_v46 = vadd.f32 %v1520_v55, %v1457_v47  ;;  %v1654_v4 = vadd.f32 %v1653_v15, %v1591_v22 }
 0x24b   : > { %v1522_v17 = vadd.f32 %v1521_v46, %v1458_v20  ;;  %v1655_v59 = vadd.f32 %v1654_v4, %v1592_v58 }
 0x24d   : > { %v1523_v33 = vadd.f32 %v1522_v17, %v1459_v42  ;;  %v1656_v57 = vadd.f32 %v1655_v59, %v1593_v29 }
 0x24f   : > { %v1524_v26 = vadd.f32 %v1523_v33, %v1460_v56  ;;  %v1657_v7 = vadd.f32 %v1656_v57, %v1594_v10 }
 0x251   : > { %v1525_v43 = vadd.f32 %v1524_v26, %v1461_v41  ;;  %v1658_v62 = vadd.f32 %v1657_v7, %v1595_v23 }
 0x253   : > { %v1526_v0 = vadd.f32 %v1525_v43, %v1462_v60  ;;  %v1659_v44 = vadd.f32 %v1658_v62, %v1596_v53 }
 0x255   : > { %v1527_v6 = vrot.slane %v1526_v0, 4  ;;  %v1660_v14 = vadd.f32 %v1659_v44, %v1597_v52 }
 0x257   : > { %v1528_v8 = vadd.f32 %v1527_v6, %v1526_v0  ;;  %v1661_v34 = vadd.f32 %v1660_v14, %v1598_v25 }
 0x259   : > { %v1529_v1 = vrot.slane %v1528_v8, 2  ;;  %v1662_v18 = vadd.f32 %v1661_v34, %v1599_v48 }
 0x25b   : > { %v1530_v3 = vadd.f32 %v1529_v1, %v1528_v8  ;;  %v1663_v2 = vrot.slane %v1662_v18, 4 }
 0x25d   : > { %v1531_v45 = vrot.slane %v1530_v3, 1  ;;  %v1664_v19 = vadd.f32 %v1663_v2, %v1662_v18 }
 0x25f   : > { %v1532_v50 = vadd.f32 %v1531_v45, %v1530_v3  ;;  %v1665_v63 = vrot.slane %v1664_v19, 2 }
 0x261   : > { %v1533_v27 = vadd.f32 %v1532_v50, %v1463_v11  ;;  %v1666_v9 = vadd.f32 %v1665_v63, %v1664_v19 }
 0x263   : > { %1534 = vst [vmem:[#allocation4] sm:$0x1] %v1533_v27  ;;  %v1667_v35 = vrot.slane %v1666_v9, 1 }
 0x264   : > { %2280 = dma.vmem_to_hbm [thread:$0]  (%p2562_p2), %s1702_s10, 16, %s1704_s12, [#allocation5]  }
 0x265   : > { %v1668_v24 = vadd.f32 %v1667_v35, %v1666_v9 }
 0x267   : > { %v1669_v38 = vadd.f32 %v1668_v24, %v1535_v5 }
 0x269   : > { %1670 = vst [vmem:[#allocation6] sm:$0x1] %v1669_v38 }
 0x26a   : > { %2282 = dma.vmem_to_hbm [thread:$0]  (%p2562_p2), %s1715_s21, 16, %s1717_s16, [#allocation5]  }
 0x26b   : > { %2460 = dma.done.wait (%p2562_p2), [#allocation5], 32  }
 0x26c   : > { %2462 = vsyncadd (%p2562_p2), [#allocation5], 4294967264 }
 0x26d PF: > { %p2296_p4 = scmp.ge.s32.totalorder %s2489_s23, 2  ;;  %s1738_s24 = sand.u32 1, %s2469_s18  }
 0x26e   : > { %s1739_s25 = scalar_lea.sflag [#allocation3], %s1738_s24 }
 0x26f   : > { %p2289_p9 = pnand %p2296_p4, %p2579_p8 }
 0x271   : > { %p2290_p10 = pneg %p2289_p9 }
 0x273   : > { %2464 = dma.done.wait (%p2290_p10), %s1739_s25, 8192  }
 0x274   : > { %2466 = vsyncadd (%p2290_p10), %s1739_s25, 4294959104  ;;  %s20_s23 = sadd.s32 1, %s2489_s23   ;;  %s3600_s18 = smov %s2473_s19 }
 0x275   : > { %p17_p11 = scmp.ge.s32.totalorder %s20_s23, 4   ;;  %s3601_s19 = smov %s2477_s20 }
 0x276   : > { %s3602_s20 = smov %s2585_s7  ;;  %s3603_s21 = smov %s2485_s22 }
 0x277   : > { %s3604_s22 = smov %s3606_s26  ;;  %19 = sbr.rel (!%p17_p11) target bundleno = 5 (0x5), region = 95 }
 0x27c   :  { %1745 = vsyncpa [#allocation3], 1 }
 0x27d   :  { %1747 = vsyncpa [#allocation3 + $0x1], 1 }
 0x27e   :  { %1748 = vsyncpa [#allocation5], 1 }

</bundles_post_ra>
